<compile_context>
chip_gen: v6e
topology: v6e:2x2x1
jax: 0.10.0
libtpu: 0.0.40
codegen_flags: <defaults>
</compile_context>

<pallas_src>
import functools

import jax
import jax.numpy as jnp
from jax import lax
from jax.experimental import pallas as pl
from jax.experimental.pallas import tpu as pltpu

EPS = 1e-5

_MAX_TILE_N = 8192            # target 4-8K point columns per grid step
_STEP_BYTES_BUDGET = 12 << 20  # per-step VMEM working-set budget (keeps v7x comfortable)


def _choose_tiling(n, max_channels):
    """Tile the point (lane) axis.

    Returns (tn, n_pad, n_split, tiles_per_split):
      tn      -- lane tile (multiple of 128, or the full extent for small clouds), sized so
                 the per-step working set stays a few MiB while blocks are big enough to
                 amortize per-grid-step overhead and keep DMA rows long.
      n_pad   -- N zero-padded to a multiple of tn (padding is masked in-kernel).
      n_split -- extra 2-way 'parallel' split of the point axis so v7x's two TensorCores
                 share work even at batch size 1 (no effect on single-TC v5e/v6e).
    """
    per_col = 20 * max_channels  # ~VMEM bytes touched per point column per grid step
    if n <= _MAX_TILE_N and n * per_col <= _STEP_BYTES_BUDGET:
        return n, n, 1, 1        # one full-extent tile (also covers N % 128 != 0 cleanly)
    tn = min(_MAX_TILE_N, max(512, (_STEP_BYTES_BUDGET // per_col) // 128 * 128))
    n_pad = pl.cdiv(n, tn) * tn
    nt = n_pad // tn
    if nt % 2 == 0:
        return tn, n_pad, 2, nt // 2
    return tn, n_pad, 1, nt


def _compiler_params(semantics, est_bytes):
    # Tile-derived VMEM request: leave the conservative default alone when it is already
    # ample; otherwise raise it, but never past 48 MiB so Mosaic keeps internal-scratch
    # headroom on v7x's 64 MiB physical VMEM (the old 60 MiB clamp left almost none).
    limit = None
    if est_bytes + (2 << 20) > (16 << 20):
        limit = int(min(48 << 20, est_bytes + (4 << 20)))
    return pltpu.CompilerParams(dimension_semantics=semantics, vmem_limit_bytes=limit)


def _reduce_kernel(*refs, fuse_bn, mask_cols, n_true, tn, tiles_per_split):
    """One fused step: previous layer's folded BN + ReLU on the loaded tile (if any),
    SharedDot matmul (f32 accumulation on the MXU), and single-pass per-channel stats
    partials via lane reductions (idle XLU slot; no ones-column MXU streaming)."""
    if fuse_bn:
        x_ref, wt_ref, scale_ref, shift_ref, y_ref, hsum_ref, ssq_ref = refs
    else:
        x_ref, wt_ref, y_ref, hsum_ref, ssq_ref = refs

    # New (batch, split) row -> reset the resident stats accumulators.
    @pl.when(pl.program_id(2) == 0)
    def _init():
        hsum_ref[...] = jnp.zeros_like(hsum_ref)
        ssq_ref[...] = jnp.zeros_like(ssq_ref)

    h = x_ref[0].astype(jnp.float32)                                     # (Cin, tn)
    if fuse_bn:
        # Previous layer's BatchNorm + ReLU fused into this layer's load: saves a full
        # HBM write + read of the activation versus a separate "apply" pass.
        h = jnp.maximum(h * scale_ref[...] + shift_ref[...], 0.0)
    if mask_cols:
        # Zero the zero-padding columns so they contribute nothing to the matmul output
        # or to the BatchNorm statistics (padding is sliced off in the wrapper).
        col0 = (pl.program_id(1) * tiles_per_split + pl.program_id(2)) * tn
        cols = col0 + lax.broadcasted_iota(jnp.int32, (1, tn), 1)
        h = jnp.where(cols < n_true, h, 0.0)

    # SharedDot (1x1 conv, bias=False): y = W^T h.  f32 operands/accumulation -- the layer
    # is HBM-bound (C <= a few hundred), so f32 MXU throughput is irrelevant, and it keeps
    # the whole in-kernel path v5e-safe and free of bf16 x bf16 dots.
    y = jnp.dot(wt_ref[...], h, preferred_element_type=jnp.float32)      # (Cout, tn)
    y_ref[0] = y.astype(y_ref.dtype)                                     # bf16 in HBM

    # Per-channel partials for BatchNorm: sum(h) per input channel (wrapper recovers
    # sum(y) = W^T sum(h) with one tiny matmul) and sum(y^2) per output channel.
    hsum_ref[...] += jnp.sum(h, axis=1, keepdims=True)[None, None]
    ssq_ref[...] += jnp.sum(y * y, axis=1, keepdims=True)[None, None]


def _apply_kernel(y_ref, scale_ref, shift_ref, o_ref):
    """Final layer's folded BatchNorm + ReLU: out = max(y * scale + shift, 0)."""
    y = y_ref[0].astype(jnp.float32)
    o_ref[0] = jnp.maximum(y * scale_ref[...] + shift_ref[...], 0.0).astype(o_ref.dtype)


def _reduce_layer(h, wt, gamma, beta, prev_scale, prev_shift, *,
                  tn, split, tiles_per_split, n_true):
    """One SharedDot -> BatchNorm1d (batch stats) stage, with the previous layer's folded
    BN + ReLU fused into the load.  Returns (y_bf16, scale, shift); scale/shift are this
    layer's folded BN, to be fused into the next layer (or the final apply pass)."""
    B, c_in, n_pad = h.shape
    c_out = wt.shape[0]
    fuse_bn = prev_scale is not None
    mask_cols = n_pad != n_true

    grid = (B, split, tiles_per_split)

    in_specs = [
        pl.BlockSpec((1, c_in, tn), lambda b, s, j: (b, 0, s * tiles_per_split + j)),
        pl.BlockSpec((c_out, c_in), lambda b, s, j: (0, 0)),
    ]
    args = [h, wt]
    if fuse_bn:
        in_specs += [pl.BlockSpec((c_in, 1), lambda b, s, j: (0, 0)),
                     pl.BlockSpec((c_in, 1), lambda b, s, j: (0, 0))]
        args += [prev_scale, prev_shift]

    kernel = functools.partial(_reduce_kernel, fuse_bn=fuse_bn, mask_cols=mask_cols,
                               n_true=n_true, tn=tn, tiles_per_split=tiles_per_split)

    est = (2 * (c_in * tn * h.dtype.itemsize + c_out * tn * 2)        # streamed blocks (x2 buf)
           + 2 * (c_out * c_in + 2 * c_in + c_in + c_out) * 4         # weights/scale/stats
           + (2 * c_out + c_in + 8) * tn * 4)                         # f32 in-kernel temps

    y, hsum, ssq = pl.pallas_call(
        kernel,
        grid=grid,
        in_specs=in_specs,
        out_specs=(
            pl.BlockSpec((1, c_out, tn), lambda b, s, j: (b, 0, s * tiles_per_split + j)),
            pl.BlockSpec((1, 1, c_in, 1), lambda b, s, j: (b, s, 0, 0)),
            pl.BlockSpec((1, 1, c_out, 1), lambda b, s, j: (b, s, 0, 0)),
        ),
        out_shape=(
            jax.ShapeDtypeStruct((B, c_out, n_pad), jnp.bfloat16),    # bf16 activation in HBM
            jax.ShapeDtypeStruct((B, split, c_in, 1), jnp.float32),   # partial sum(h)
            jax.ShapeDtypeStruct((B, split, c_out, 1), jnp.float32),  # partial sum(y^2)
        ),
        # Batch and N-split axes "parallel" (v7x megacore), inner N-tile axis "arbitrary"
        # because the stats accumulator blocks are resident over it.
        compiler_params=_compiler_params(("parallel", "parallel", "arbitrary"), est),
    )(*args)

    # Fold BatchNorm into per-channel scale/shift ONCE per layer (training-mode batch
    # statistics: biased variance, eps=1e-5).  mean = W^T @ sum(h) / m.  Per-(batch, split)
    # partial sums keep the f32 accumulation chains short; a compensated sum would further
    # harden E[y^2] - E[y]^2 at very large B*N.
    m = float(B * n_true)
    mean = jnp.dot(wt, jnp.sum(hsum, axis=(0, 1))) / m                # (Cout, 1)
    ex2 = jnp.sum(ssq, axis=(0, 1)) / m
    var = jnp.maximum(ex2 - mean * mean, 0.0)
    scale = gamma * lax.rsqrt(var + EPS)
    shift = beta - mean * scale
    return y, scale, shift


def _apply_final(y, scale, shift, *, tn):
    """Standalone BN + ReLU only for the last layer (everything else is fused)."""
    B, c_out, n_pad = y.shape
    nt = n_pad // tn
    est = 2 * (c_out * tn * 2 + c_out * tn * 4) + (c_out + 8) * tn * 4
    return pl.pallas_call(
        _apply_kernel,
        grid=(B, nt),
        in_specs=[
            pl.BlockSpec((1, c_out, tn), lambda b, j: (b, 0, j)),
            pl.BlockSpec((c_out, 1), lambda b, j: (0, 0)),
            pl.BlockSpec((c_out, 1), lambda b, j: (0, 0)),
        ],
        out_specs=pl.BlockSpec((1, c_out, tn), lambda b, j: (b, 0, j)),
        out_shape=jax.ShapeDtypeStruct((B, c_out, n_pad), jnp.float32),
        compiler_params=_compiler_params(("parallel", "parallel"), est),
    )(y, scale, shift)


def pointnet_cloud_encoder(x_ncw, params):
    """x_ncw: (B, C_in, N) float32, PyTorch NCW layout (consumed natively, no transpose).
    params: list of (W[Cin, Cout] f32, gamma[Cout, 1] f32, beta[Cout, 1] f32)."""
    B, _, n_true = x_ncw.shape
    max_channels = max(max(w.shape) for w, _, _ in params)
    tn, n_pad, split, tiles_per_split = _choose_tiling(n_true, max_channels)

    h = x_ncw
    if n_pad != n_true:
        h = jnp.pad(h, ((0, 0), (0, 0), (0, n_pad - n_true)))

    scale = shift = None
    for w, gamma, beta in params:
        wt = jnp.transpose(w)                                         # (Cout, Cin) f32
        h, scale, shift = _reduce_layer(h, wt, gamma, beta, scale, shift,
                                        tn=tn, split=split,
                                        tiles_per_split=tiles_per_split, n_true=n_true)
    out = _apply_final(h, scale, shift, tn=tn)
    if n_pad != n_true:
        out = out[:, :, :n_true]
    return out                                                        # (B, C_out, N) f32


def init_params(key, init_n_channels, init_n_features, n_features):
    """Deterministic synthetic weights: SharedDot weight (Cin, Cout), BN gamma/beta (Cout, 1)."""
    dims = [init_n_channels, init_n_features] + list(n_features)
    params = []
    for i in range(len(dims) - 1):
        key, kw, kg, kb = jax.random.split(key, 4)
        cin, cout = dims[i], dims[i + 1]
        w = jax.random.normal(kw, (cin, cout), jnp.float32) / jnp.sqrt(float(cin))
        gamma = 1.0 + 0.1 * jax.random.normal(kg, (cout, 1), jnp.float32)
        beta = 0.1 * jax.random.normal(kb, (cout, 1), jnp.float32)
        params.append((w, gamma, beta))
    return params


def reference_encoder_f32(x_ncw, params):
    """Pure-fp32 JAX reference mirroring the PyTorch forward (training-mode BN).
    All dots are f32 (no bf16 x bf16 = f32, which the CPU dot thunk rejects)."""
    h = x_ncw.astype(jnp.float32)
    for w, gamma, beta in params:
        y = jnp.einsum("bcn,cf->bfn", h, w)
        mean = jnp.mean(y, axis=(0, 2), keepdims=True)
        var = jnp.mean((y - mean) ** 2, axis=(0, 2), keepdims=True)
        h = jnp.maximum((y - mean) * lax.rsqrt(var + EPS) * gamma[None] + beta[None], 0.0)
    return h


def reference_encoder_matched(x_ncw, params):
    """Reference with the kernel's numerics: f32 matmuls and BN math, biased single-pass
    clamped variance, folded BN, and bf16 rounding of each layer's y at the HBM boundary."""
    h = x_ncw.astype(jnp.float32)
    for w, gamma, beta in params:
        y = jnp.einsum("bcn,cf->bfn", h, w)
        mean = jnp.mean(y, axis=(0, 2), keepdims=True)
        var = jnp.maximum(jnp.mean(y * y, axis=(0, 2), keepdims=True) - mean * mean, 0.0)
        scale = gamma[None] * lax.rsqrt(var + EPS)
        shift = beta[None] - mean * scale
        y = y.astype(jnp.bfloat16).astype(jnp.float32)   # kernel stores y bf16 between layers
        h = jnp.maximum(y * scale + shift, 0.0)
    return h


if __name__ == "__main__":
    # PointNetCloudEncoder(init_n_channels=4, init_n_features=32, n_features=[32, 64])
    init_n_channels, init_n_features, n_features = 4, 32, [32, 64]
    B, N = 2, 16

    key = jax.random.PRNGKey(0)
    key, kx = jax.random.split(key)
    x = jax.random.normal(kx, (B, init_n_channels, N), jnp.float32)   # NCW, like PyTorch

    params = init_params(key, init_n_channels, init_n_features, n_features)

    encoder = jax.jit(pointnet_cloud_encoder)
    out = jax.block_until_ready(encoder(x, params))

    assert out.shape == (B, n_features[-1], N), out.shape
    assert out.dtype == jnp.float32, out.dtype

    # Check against a reference matching the kernel's numerics (f32 math, bf16 inter-layer
    # storage).  Tolerance leaves room for the rare bf16 rounding-boundary flip caused by
    # differing f32 accumulation orders.
    ref_m = jax.block_until_ready(reference_encoder_matched(x, params))
    assert jnp.allclose(out, ref_m, atol=2e-2, rtol=2e-2), "mismatch vs matched reference"

    # Loose sanity check against the pure-fp32 (PyTorch-equivalent) reference: only the
    # bf16 storage rounding of y separates them.
    ref_f32 = jax.block_until_ready(reference_encoder_f32(x, params))
    assert jnp.allclose(out, ref_f32, atol=0.25, rtol=0.25), "mismatch vs fp32 reference"

    print("KERNEL_OK")
</pallas_src>

<mosaic_0001>
module attributes {stable_mosaic.version = 11 : i64} {
  func.func @_reduce_kernel(%arg0: i32, %arg1: i32, %arg2: i32, %arg3: memref<1x4x16xf32, #tpu.memory_space<vmem>>, %arg4: memref<32x4xf32, #tpu.memory_space<vmem>>, %arg5: memref<1x32x16xbf16, #tpu.memory_space<vmem>>, %arg6: memref<1x1x4x1xf32, #tpu.memory_space<vmem>>, %arg7: memref<1x1x32x1xf32, #tpu.memory_space<vmem>>) attributes {dimension_semantics = [#tpu.dimension_semantics<parallel>, #tpu.dimension_semantics<parallel>, #tpu.dimension_semantics<arbitrary>], iteration_bounds = array<i64: 2, 1, 1>, scalar_prefetch = 0 : i64, scratch_operands = 0 : i64, tpu.core_type = #tpu.core_type<tc>, window_params = [{transform_indices = @transform_0, window_bounds = array<i64: 1, 4, 16>}, {pipeline_mode = #tpu.pipeline_mode<synchronous>, transform_indices = @transform_1, window_bounds = array<i64: 32, 4>}, {transform_indices = @transform_2, window_bounds = array<i64: 1, 32, 16>}, {transform_indices = @transform_3, window_bounds = array<i64: 1, 1, 4, 1>}, {transform_indices = @transform_4, window_bounds = array<i64: 1, 1, 32, 1>}]} {
    %c0_i32 = arith.constant 0 : i32
    %0 = arith.cmpi eq, %arg2, %c0_i32 : i32
    %1 = arith.extui %0 : i1 to i32
    %c0_i32_0 = arith.constant 0 : i32
    %2 = arith.cmpi ne, %1, %c0_i32_0 : i32
    scf.if %2 {
      %cst_26 = arith.constant 0.000000e+00 : f32
      %24 = vector.broadcast %cst_26 : f32 to vector<1x1x4x1xf32>
      %c0_27 = arith.constant 0 : index
      %c0_28 = arith.constant 0 : index
      %c0_29 = arith.constant 0 : index
      %c0_30 = arith.constant 0 : index
      %25 = vector.load %arg6[%c0_27, %c0_28, %c0_29, %c0_30] : memref<1x1x4x1xf32, #tpu.memory_space<vmem>>, vector<1x1x4x1xf32>
      tpu.vector_store %arg6[%c0_27, %c0_28, %c0_29, %c0_30], %24 {strides = array<i32>} : memref<1x1x4x1xf32, #tpu.memory_space<vmem>>, vector<1x1x4x1xf32>,
      %cst_31 = arith.constant 0.000000e+00 : f32
      %26 = vector.broadcast %cst_31 : f32 to vector<1x1x32x1xf32>
      %c0_32 = arith.constant 0 : index
      %c0_33 = arith.constant 0 : index
      %c0_34 = arith.constant 0 : index
      %c0_35 = arith.constant 0 : index
      %27 = vector.load %arg7[%c0_32, %c0_33, %c0_34, %c0_35] : memref<1x1x32x1xf32, #tpu.memory_space<vmem>>, vector<1x1x32x1xf32>
      tpu.vector_store %arg7[%c0_32, %c0_33, %c0_34, %c0_35], %26 {strides = array<i32>} : memref<1x1x32x1xf32, #tpu.memory_space<vmem>>, vector<1x1x32x1xf32>,
    } else {
    }
    %c0 = arith.constant 0 : index
    %c0_1 = arith.constant 0 : index
    %c0_2 = arith.constant 0 : index
    %3 = vector.load %arg3[%c0, %c0_1, %c0_2] : memref<1x4x16xf32, #tpu.memory_space<vmem>>, vector<1x4x16xf32>
    %4 = vector.shape_cast %3 : vector<1x4x16xf32> to vector<4x16xf32>
    %c0_3 = arith.constant 0 : index
    %c0_4 = arith.constant 0 : index
    %5 = vector.load %arg4[%c0_3, %c0_4] : memref<32x4xf32, #tpu.memory_space<vmem>>, vector<32x4xf32>
    %cst = arith.constant dense<0.000000e+00> : vector<32x16xf32>
    %6 = tpu.matmul %5, %4, %cst {dimension_numbers = #tpu.dot_dimension_numbers<[1], [0], [0], [1], [0, 0, 1, 1], [], []>} : vector<32x4xf32>, vector<4x16xf32>, vector<32x16xf32> -> vector<32x16xf32>
    %7 = arith.truncf %6 : vector<32x16xf32> to vector<32x16xbf16>
    %c0_5 = arith.constant 0 : index
    %c0_6 = arith.constant 0 : index
    %c0_7 = arith.constant 0 : index
    %8 = vector.load %arg5[%c0_5, %c0_6, %c0_7] : memref<1x32x16xbf16, #tpu.memory_space<vmem>>, vector<1x32x16xbf16>
    %9 = vector.shape_cast %8 : vector<1x32x16xbf16> to vector<32x16xbf16>
    %10 = vector.shape_cast %7 : vector<32x16xbf16> to vector<1x32x16xbf16>
    tpu.vector_store %arg5[%c0_5, %c0_6, %c0_7], %10 {strides = array<i32>} : memref<1x32x16xbf16, #tpu.memory_space<vmem>>, vector<1x32x16xbf16>,
    %c0_8 = arith.constant 0 : index
    %c0_9 = arith.constant 0 : index
    %c0_10 = arith.constant 0 : index
    %c0_11 = arith.constant 0 : index
    %11 = vector.load %arg6[%c0_8, %c0_9, %c0_10, %c0_11] : memref<1x1x4x1xf32, #tpu.memory_space<vmem>>, vector<1x1x4x1xf32>
    %cst_12 = arith.constant dense<0.000000e+00> : vector<4xf32>
    %12 = vector.multi_reduction <add>, %4, %cst_12 [1] : vector<4x16xf32> to vector<4xf32>
    %13 = vector.shape_cast %12 : vector<4xf32> to vector<4x1xf32>
    %14 = vector.shape_cast %13 : vector<4x1xf32> to vector<1x1x4x1xf32>
    %15 = arith.addf %11, %14 : vector<1x1x4x1xf32>
    %c0_13 = arith.constant 0 : index
    %c0_14 = arith.constant 0 : index
    %c0_15 = arith.constant 0 : index
    %c0_16 = arith.constant 0 : index
    %16 = vector.load %arg6[%c0_13, %c0_14, %c0_15, %c0_16] : memref<1x1x4x1xf32, #tpu.memory_space<vmem>>, vector<1x1x4x1xf32>
    tpu.vector_store %arg6[%c0_13, %c0_14, %c0_15, %c0_16], %15 {strides = array<i32>} : memref<1x1x4x1xf32, #tpu.memory_space<vmem>>, vector<1x1x4x1xf32>,
    %c0_17 = arith.constant 0 : index
    %c0_18 = arith.constant 0 : index
    %c0_19 = arith.constant 0 : index
    %c0_20 = arith.constant 0 : index
    %17 = vector.load %arg7[%c0_17, %c0_18, %c0_19, %c0_20] : memref<1x1x32x1xf32, #tpu.memory_space<vmem>>, vector<1x1x32x1xf32>
    %18 = arith.mulf %6, %6 : vector<32x16xf32>
    %cst_21 = arith.constant dense<0.000000e+00> : vector<32xf32>
    %19 = vector.multi_reduction <add>, %18, %cst_21 [1] : vector<32x16xf32> to vector<32xf32>
    %20 = vector.shape_cast %19 : vector<32xf32> to vector<32x1xf32>
    %21 = vector.shape_cast %20 : vector<32x1xf32> to vector<1x1x32x1xf32>
    %22 = arith.addf %17, %21 : vector<1x1x32x1xf32>
    %c0_22 = arith.constant 0 : index
    %c0_23 = arith.constant 0 : index
    %c0_24 = arith.constant 0 : index
    %c0_25 = arith.constant 0 : index
    %23 = vector.load %arg7[%c0_22, %c0_23, %c0_24, %c0_25] : memref<1x1x32x1xf32, #tpu.memory_space<vmem>>, vector<1x1x32x1xf32>
    tpu.vector_store %arg7[%c0_22, %c0_23, %c0_24, %c0_25], %22 {strides = array<i32>} : memref<1x1x32x1xf32, #tpu.memory_space<vmem>>, vector<1x1x32x1xf32>,
    return
  }
  func.func @transform_0(%arg0: i32, %arg1: i32, %arg2: i32) -> (i32, i32, i32) {
    %c1_i32 = arith.constant 1 : i32
    %0 = arith.muli %arg1, %c1_i32 : i32
    %1 = arith.addi %0, %arg2 : i32
    %c0_i32 = arith.constant 0 : i32
    %c0_i32_0 = arith.constant 0 : i32
    return %arg0, %c0_i32, %1 : i32, i32, i32
  }
  func.func @transform_1(%arg0: i32, %arg1: i32, %arg2: i32) -> (i32, i32) {
    %c0_i32 = arith.constant 0 : i32
    %c0_i32_0 = arith.constant 0 : i32
    %c0_i32_1 = arith.constant 0 : i32
    return %c0_i32, %c0_i32_0 : i32, i32
  }
  func.func @transform_2(%arg0: i32, %arg1: i32, %arg2: i32) -> (i32, i32, i32) {
    %c1_i32 = arith.constant 1 : i32
    %0 = arith.muli %arg1, %c1_i32 : i32
    %1 = arith.addi %0, %arg2 : i32
    %c0_i32 = arith.constant 0 : i32
    %c0_i32_0 = arith.constant 0 : i32
    return %arg0, %c0_i32, %1 : i32, i32, i32
  }
  func.func @transform_3(%arg0: i32, %arg1: i32, %arg2: i32) -> (i32, i32, i32, i32) {
    %c0_i32 = arith.constant 0 : i32
    %c0_i32_0 = arith.constant 0 : i32
    %c0_i32_1 = arith.constant 0 : i32
    return %arg0, %arg1, %c0_i32, %c0_i32_0 : i32, i32, i32, i32
  }
  func.func @transform_4(%arg0: i32, %arg1: i32, %arg2: i32) -> (i32, i32, i32, i32) {
    %c0_i32 = arith.constant 0 : i32
    %c0_i32_0 = arith.constant 0 : i32
    %c0_i32_1 = arith.constant 0 : i32
    return %arg0, %arg1, %c0_i32, %c0_i32_0 : i32, i32, i32, i32
  }
}

module attributes {stable_mosaic.version = 11 : i64} {
  func.func @_reduce_kernel(%arg0: i32, %arg1: i32, %arg2: i32, %arg3: memref<1x32x16xbf16, #tpu.memory_space<vmem>>, %arg4: memref<32x32xf32, #tpu.memory_space<vmem>>, %arg5: memref<32x1xf32, #tpu.memory_space<vmem>>, %arg6: memref<32x1xf32, #tpu.memory_space<vmem>>, %arg7: memref<1x32x16xbf16, #tpu.memory_space<vmem>>, %arg8: memref<1x1x32x1xf32, #tpu.memory_space<vmem>>, %arg9: memref<1x1x32x1xf32, #tpu.memory_space<vmem>>) attributes {dimension_semantics = [#tpu.dimension_semantics<parallel>, #tpu.dimension_semantics<parallel>, #tpu.dimension_semantics<arbitrary>], iteration_bounds = array<i64: 2, 1, 1>, scalar_prefetch = 0 : i64, scratch_operands = 0 : i64, tpu.core_type = #tpu.core_type<tc>, window_params = [{transform_indices = @transform_0, window_bounds = array<i64: 1, 32, 16>}, {pipeline_mode = #tpu.pipeline_mode<synchronous>, transform_indices = @transform_1, window_bounds = array<i64: 32, 32>}, {pipeline_mode = #tpu.pipeline_mode<synchronous>, transform_indices = @transform_2, window_bounds = array<i64: 32, 1>}, {pipeline_mode = #tpu.pipeline_mode<synchronous>, transform_indices = @transform_3, window_bounds = array<i64: 32, 1>}, {transform_indices = @transform_4, window_bounds = array<i64: 1, 32, 16>}, {transform_indices = @transform_5, window_bounds = array<i64: 1, 1, 32, 1>}, {transform_indices = @transform_6, window_bounds = array<i64: 1, 1, 32, 1>}]} {
    %c0_i32 = arith.constant 0 : i32
    %0 = arith.cmpi eq, %arg2, %c0_i32 : i32
    %1 = arith.extui %0 : i1 to i32
    %c0_i32_0 = arith.constant 0 : i32
    %2 = arith.cmpi ne, %1, %c0_i32_0 : i32
    scf.if %2 {
      %cst_31 = arith.constant 0.000000e+00 : f32
      %33 = vector.broadcast %cst_31 : f32 to vector<1x1x32x1xf32>
      %c0_32 = arith.constant 0 : index
      %c0_33 = arith.constant 0 : index
      %c0_34 = arith.constant 0 : index
      %c0_35 = arith.constant 0 : index
      %34 = vector.load %arg8[%c0_32, %c0_33, %c0_34, %c0_35] : memref<1x1x32x1xf32, #tpu.memory_space<vmem>>, vector<1x1x32x1xf32>
      tpu.vector_store %arg8[%c0_32, %c0_33, %c0_34, %c0_35], %33 {strides = array<i32>} : memref<1x1x32x1xf32, #tpu.memory_space<vmem>>, vector<1x1x32x1xf32>,
      %cst_36 = arith.constant 0.000000e+00 : f32
      %35 = vector.broadcast %cst_36 : f32 to vector<1x1x32x1xf32>
      %c0_37 = arith.constant 0 : index
      %c0_38 = arith.constant 0 : index
      %c0_39 = arith.constant 0 : index
      %c0_40 = arith.constant 0 : index
      %36 = vector.load %arg9[%c0_37, %c0_38, %c0_39, %c0_40] : memref<1x1x32x1xf32, #tpu.memory_space<vmem>>, vector<1x1x32x1xf32>
      tpu.vector_store %arg9[%c0_37, %c0_38, %c0_39, %c0_40], %35 {strides = array<i32>} : memref<1x1x32x1xf32, #tpu.memory_space<vmem>>, vector<1x1x32x1xf32>,
    } else {
    }
    %c0 = arith.constant 0 : index
    %c0_1 = arith.constant 0 : index
    %c0_2 = arith.constant 0 : index
    %3 = vector.load %arg3[%c0, %c0_1, %c0_2] : memref<1x32x16xbf16, #tpu.memory_space<vmem>>, vector<1x32x16xbf16>
    %4 = vector.shape_cast %3 : vector<1x32x16xbf16> to vector<32x16xbf16>
    %5 = arith.extf %4 : vector<32x16xbf16> to vector<32x16xf32>
    %c0_3 = arith.constant 0 : index
    %c0_4 = arith.constant 0 : index
    %6 = vector.load %arg5[%c0_3, %c0_4] : memref<32x1xf32, #tpu.memory_space<vmem>>, vector<32x1xf32>
    %7 = vector.broadcast %6 : vector<32x1xf32> to vector<32x16xf32>
    %8 = arith.mulf %5, %7 : vector<32x16xf32>
    %c0_5 = arith.constant 0 : index
    %c0_6 = arith.constant 0 : index
    %9 = vector.load %arg6[%c0_5, %c0_6] : memref<32x1xf32, #tpu.memory_space<vmem>>, vector<32x1xf32>
    %10 = vector.broadcast %9 : vector<32x1xf32> to vector<32x16xf32>
    %11 = arith.addf %8, %10 : vector<32x16xf32>
    %cst = arith.constant 0.000000e+00 : f32
    %12 = vector.broadcast %cst : f32 to vector<32x16xf32>
    %13 = arith.maximumf %11, %12 : vector<32x16xf32>
    %c0_7 = arith.constant 0 : index
    %c0_8 = arith.constant 0 : index
    %14 = vector.load %arg4[%c0_7, %c0_8] : memref<32x32xf32, #tpu.memory_space<vmem>>, vector<32x32xf32>
    %cst_9 = arith.constant dense<0.000000e+00> : vector<32x16xf32>
    %15 = tpu.matmul %14, %13, %cst_9 {dimension_numbers = #tpu.dot_dimension_numbers<[1], [0], [0], [1], [0, 0, 1, 1], [], []>} : vector<32x32xf32>, vector<32x16xf32>, vector<32x16xf32> -> vector<32x16xf32>
    %16 = arith.truncf %15 : vector<32x16xf32> to vector<32x16xbf16>
    %c0_10 = arith.constant 0 : index
    %c0_11 = arith.constant 0 : index
    %c0_12 = arith.constant 0 : index
    %17 = vector.load %arg7[%c0_10, %c0_11, %c0_12] : memref<1x32x16xbf16, #tpu.memory_space<vmem>>, vector<1x32x16xbf16>
    %18 = vector.shape_cast %17 : vector<1x32x16xbf16> to vector<32x16xbf16>
    %19 = vector.shape_cast %16 : vector<32x16xbf16> to vector<1x32x16xbf16>
    tpu.vector_store %arg7[%c0_10, %c0_11, %c0_12], %19 {strides = array<i32>} : memref<1x32x16xbf16, #tpu.memory_space<vmem>>, vector<1x32x16xbf16>,
    %c0_13 = arith.constant 0 : index
    %c0_14 = arith.constant 0 : index
    %c0_15 = arith.constant 0 : index
    %c0_16 = arith.constant 0 : index
    %20 = vector.load %arg8[%c0_13, %c0_14, %c0_15, %c0_16] : memref<1x1x32x1xf32, #tpu.memory_space<vmem>>, vector<1x1x32x1xf32>
    %cst_17 = arith.constant dense<0.000000e+00> : vector<32xf32>
    %21 = vector.multi_reduction <add>, %13, %cst_17 [1] : vector<32x16xf32> to vector<32xf32>
    %22 = vector.shape_cast %21 : vector<32xf32> to vector<32x1xf32>
    %23 = vector.shape_cast %22 : vector<32x1xf32> to vector<1x1x32x1xf32>
    %24 = arith.addf %20, %23 : vector<1x1x32x1xf32>
    %c0_18 = arith.constant 0 : index
    %c0_19 = arith.constant 0 : index
    %c0_20 = arith.constant 0 : index
    %c0_21 = arith.constant 0 : index
    %25 = vector.load %arg8[%c0_18, %c0_19, %c0_20, %c0_21] : memref<1x1x32x1xf32, #tpu.memory_space<vmem>>, vector<1x1x32x1xf32>
    tpu.vector_store %arg8[%c0_18, %c0_19, %c0_20, %c0_21], %24 {strides = array<i32>} : memref<1x1x32x1xf32, #tpu.memory_space<vmem>>, vector<1x1x32x1xf32>,
    %c0_22 = arith.constant 0 : index
    %c0_23 = arith.constant 0 : index
    %c0_24 = arith.constant 0 : index
    %c0_25 = arith.constant 0 : index
    %26 = vector.load %arg9[%c0_22, %c0_23, %c0_24, %c0_25] : memref<1x1x32x1xf32, #tpu.memory_space<vmem>>, vector<1x1x32x1xf32>
    %27 = arith.mulf %15, %15 : vector<32x16xf32>
    %cst_26 = arith.constant dense<0.000000e+00> : vector<32xf32>
    %28 = vector.multi_reduction <add>, %27, %cst_26 [1] : vector<32x16xf32> to vector<32xf32>
    %29 = vector.shape_cast %28 : vector<32xf32> to vector<32x1xf32>
    %30 = vector.shape_cast %29 : vector<32x1xf32> to vector<1x1x32x1xf32>
    %31 = arith.addf %26, %30 : vector<1x1x32x1xf32>
    %c0_27 = arith.constant 0 : index
    %c0_28 = arith.constant 0 : index
    %c0_29 = arith.constant 0 : index
    %c0_30 = arith.constant 0 : index
    %32 = vector.load %arg9[%c0_27, %c0_28, %c0_29, %c0_30] : memref<1x1x32x1xf32, #tpu.memory_space<vmem>>, vector<1x1x32x1xf32>
    tpu.vector_store %arg9[%c0_27, %c0_28, %c0_29, %c0_30], %31 {strides = array<i32>} : memref<1x1x32x1xf32, #tpu.memory_space<vmem>>, vector<1x1x32x1xf32>,
    return
  }
  func.func @transform_0(%arg0: i32, %arg1: i32, %arg2: i32) -> (i32, i32, i32) {
    %c1_i32 = arith.constant 1 : i32
    %0 = arith.muli %arg1, %c1_i32 : i32
    %1 = arith.addi %0, %arg2 : i32
    %c0_i32 = arith.constant 0 : i32
    %c0_i32_0 = arith.constant 0 : i32
    return %arg0, %c0_i32, %1 : i32, i32, i32
  }
  func.func @transform_1(%arg0: i32, %arg1: i32, %arg2: i32) -> (i32, i32) {
    %c0_i32 = arith.constant 0 : i32
    %c0_i32_0 = arith.constant 0 : i32
    %c0_i32_1 = arith.constant 0 : i32
    return %c0_i32, %c0_i32_0 : i32, i32
  }
  func.func @transform_2(%arg0: i32, %arg1: i32, %arg2: i32) -> (i32, i32) {
    %c0_i32 = arith.constant 0 : i32
    %c0_i32_0 = arith.constant 0 : i32
    %c0_i32_1 = arith.constant 0 : i32
    return %c0_i32, %c0_i32_0 : i32, i32
  }
  func.func @transform_3(%arg0: i32, %arg1: i32, %arg2: i32) -> (i32, i32) {
    %c0_i32 = arith.constant 0 : i32
    %c0_i32_0 = arith.constant 0 : i32
    %c0_i32_1 = arith.constant 0 : i32
    return %c0_i32, %c0_i32_0 : i32, i32
  }
  func.func @transform_4(%arg0: i32, %arg1: i32, %arg2: i32) -> (i32, i32, i32) {
    %c1_i32 = arith.constant 1 : i32
    %0 = arith.muli %arg1, %c1_i32 : i32
    %1 = arith.addi %0, %arg2 : i32
    %c0_i32 = arith.constant 0 : i32
    %c0_i32_0 = arith.constant 0 : i32
    return %arg0, %c0_i32, %1 : i32, i32, i32
  }
  func.func @transform_5(%arg0: i32, %arg1: i32, %arg2: i32) -> (i32, i32, i32, i32) {
    %c0_i32 = arith.constant 0 : i32
    %c0_i32_0 = arith.constant 0 : i32
    %c0_i32_1 = arith.constant 0 : i32
    return %arg0, %arg1, %c0_i32, %c0_i32_0 : i32, i32, i32, i32
  }
  func.func @transform_6(%arg0: i32, %arg1: i32, %arg2: i32) -> (i32, i32, i32, i32) {
    %c0_i32 = arith.constant 0 : i32
    %c0_i32_0 = arith.constant 0 : i32
    %c0_i32_1 = arith.constant 0 : i32
    return %arg0, %arg1, %c0_i32, %c0_i32_0 : i32, i32, i32, i32
  }
}

module attributes {stable_mosaic.version = 11 : i64} {
  func.func @_reduce_kernel(%arg0: i32, %arg1: i32, %arg2: i32, %arg3: memref<1x32x16xbf16, #tpu.memory_space<vmem>>, %arg4: memref<64x32xf32, #tpu.memory_space<vmem>>, %arg5: memref<32x1xf32, #tpu.memory_space<vmem>>, %arg6: memref<32x1xf32, #tpu.memory_space<vmem>>, %arg7: memref<1x64x16xbf16, #tpu.memory_space<vmem>>, %arg8: memref<1x1x32x1xf32, #tpu.memory_space<vmem>>, %arg9: memref<1x1x64x1xf32, #tpu.memory_space<vmem>>) attributes {dimension_semantics = [#tpu.dimension_semantics<parallel>, #tpu.dimension_semantics<parallel>, #tpu.dimension_semantics<arbitrary>], iteration_bounds = array<i64: 2, 1, 1>, scalar_prefetch = 0 : i64, scratch_operands = 0 : i64, tpu.core_type = #tpu.core_type<tc>, window_params = [{transform_indices = @transform_0, window_bounds = array<i64: 1, 32, 16>}, {pipeline_mode = #tpu.pipeline_mode<synchronous>, transform_indices = @transform_1, window_bounds = array<i64: 64, 32>}, {pipeline_mode = #tpu.pipeline_mode<synchronous>, transform_indices = @transform_2, window_bounds = array<i64: 32, 1>}, {pipeline_mode = #tpu.pipeline_mode<synchronous>, transform_indices = @transform_3, window_bounds = array<i64: 32, 1>}, {transform_indices = @transform_4, window_bounds = array<i64: 1, 64, 16>}, {transform_indices = @transform_5, window_bounds = array<i64: 1, 1, 32, 1>}, {transform_indices = @transform_6, window_bounds = array<i64: 1, 1, 64, 1>}]} {
    %c0_i32 = arith.constant 0 : i32
    %0 = arith.cmpi eq, %arg2, %c0_i32 : i32
    %1 = arith.extui %0 : i1 to i32
    %c0_i32_0 = arith.constant 0 : i32
    %2 = arith.cmpi ne, %1, %c0_i32_0 : i32
    scf.if %2 {
      %cst_31 = arith.constant 0.000000e+00 : f32
      %33 = vector.broadcast %cst_31 : f32 to vector<1x1x32x1xf32>
      %c0_32 = arith.constant 0 : index
      %c0_33 = arith.constant 0 : index
      %c0_34 = arith.constant 0 : index
      %c0_35 = arith.constant 0 : index
      %34 = vector.load %arg8[%c0_32, %c0_33, %c0_34, %c0_35] : memref<1x1x32x1xf32, #tpu.memory_space<vmem>>, vector<1x1x32x1xf32>
      tpu.vector_store %arg8[%c0_32, %c0_33, %c0_34, %c0_35], %33 {strides = array<i32>} : memref<1x1x32x1xf32, #tpu.memory_space<vmem>>, vector<1x1x32x1xf32>,
      %cst_36 = arith.constant 0.000000e+00 : f32
      %35 = vector.broadcast %cst_36 : f32 to vector<1x1x64x1xf32>
      %c0_37 = arith.constant 0 : index
      %c0_38 = arith.constant 0 : index
      %c0_39 = arith.constant 0 : index
      %c0_40 = arith.constant 0 : index
      %36 = vector.load %arg9[%c0_37, %c0_38, %c0_39, %c0_40] : memref<1x1x64x1xf32, #tpu.memory_space<vmem>>, vector<1x1x64x1xf32>
      tpu.vector_store %arg9[%c0_37, %c0_38, %c0_39, %c0_40], %35 {strides = array<i32>} : memref<1x1x64x1xf32, #tpu.memory_space<vmem>>, vector<1x1x64x1xf32>,
    } else {
    }
    %c0 = arith.constant 0 : index
    %c0_1 = arith.constant 0 : index
    %c0_2 = arith.constant 0 : index
    %3 = vector.load %arg3[%c0, %c0_1, %c0_2] : memref<1x32x16xbf16, #tpu.memory_space<vmem>>, vector<1x32x16xbf16>
    %4 = vector.shape_cast %3 : vector<1x32x16xbf16> to vector<32x16xbf16>
    %5 = arith.extf %4 : vector<32x16xbf16> to vector<32x16xf32>
    %c0_3 = arith.constant 0 : index
    %c0_4 = arith.constant 0 : index
    %6 = vector.load %arg5[%c0_3, %c0_4] : memref<32x1xf32, #tpu.memory_space<vmem>>, vector<32x1xf32>
    %7 = vector.broadcast %6 : vector<32x1xf32> to vector<32x16xf32>
    %8 = arith.mulf %5, %7 : vector<32x16xf32>
    %c0_5 = arith.constant 0 : index
    %c0_6 = arith.constant 0 : index
    %9 = vector.load %arg6[%c0_5, %c0_6] : memref<32x1xf32, #tpu.memory_space<vmem>>, vector<32x1xf32>
    %10 = vector.broadcast %9 : vector<32x1xf32> to vector<32x16xf32>
    %11 = arith.addf %8, %10 : vector<32x16xf32>
    %cst = arith.constant 0.000000e+00 : f32
    %12 = vector.broadcast %cst : f32 to vector<32x16xf32>
    %13 = arith.maximumf %11, %12 : vector<32x16xf32>
    %c0_7 = arith.constant 0 : index
    %c0_8 = arith.constant 0 : index
    %14 = vector.load %arg4[%c0_7, %c0_8] : memref<64x32xf32, #tpu.memory_space<vmem>>, vector<64x32xf32>
    %cst_9 = arith.constant dense<0.000000e+00> : vector<64x16xf32>
    %15 = tpu.matmul %14, %13, %cst_9 {dimension_numbers = #tpu.dot_dimension_numbers<[1], [0], [0], [1], [0, 0, 1, 1], [], []>} : vector<64x32xf32>, vector<32x16xf32>, vector<64x16xf32> -> vector<64x16xf32>
    %16 = arith.truncf %15 : vector<64x16xf32> to vector<64x16xbf16>
    %c0_10 = arith.constant 0 : index
    %c0_11 = arith.constant 0 : index
    %c0_12 = arith.constant 0 : index
    %17 = vector.load %arg7[%c0_10, %c0_11, %c0_12] : memref<1x64x16xbf16, #tpu.memory_space<vmem>>, vector<1x64x16xbf16>
    %18 = vector.shape_cast %17 : vector<1x64x16xbf16> to vector<64x16xbf16>
    %19 = vector.shape_cast %16 : vector<64x16xbf16> to vector<1x64x16xbf16>
    tpu.vector_store %arg7[%c0_10, %c0_11, %c0_12], %19 {strides = array<i32>} : memref<1x64x16xbf16, #tpu.memory_space<vmem>>, vector<1x64x16xbf16>,
    %c0_13 = arith.constant 0 : index
    %c0_14 = arith.constant 0 : index
    %c0_15 = arith.constant 0 : index
    %c0_16 = arith.constant 0 : index
    %20 = vector.load %arg8[%c0_13, %c0_14, %c0_15, %c0_16] : memref<1x1x32x1xf32, #tpu.memory_space<vmem>>, vector<1x1x32x1xf32>
    %cst_17 = arith.constant dense<0.000000e+00> : vector<32xf32>
    %21 = vector.multi_reduction <add>, %13, %cst_17 [1] : vector<32x16xf32> to vector<32xf32>
    %22 = vector.shape_cast %21 : vector<32xf32> to vector<32x1xf32>
    %23 = vector.shape_cast %22 : vector<32x1xf32> to vector<1x1x32x1xf32>
    %24 = arith.addf %20, %23 : vector<1x1x32x1xf32>
    %c0_18 = arith.constant 0 : index
    %c0_19 = arith.constant 0 : index
    %c0_20 = arith.constant 0 : index
    %c0_21 = arith.constant 0 : index
    %25 = vector.load %arg8[%c0_18, %c0_19, %c0_20, %c0_21] : memref<1x1x32x1xf32, #tpu.memory_space<vmem>>, vector<1x1x32x1xf32>
    tpu.vector_store %arg8[%c0_18, %c0_19, %c0_20, %c0_21], %24 {strides = array<i32>} : memref<1x1x32x1xf32, #tpu.memory_space<vmem>>, vector<1x1x32x1xf32>,
    %c0_22 = arith.constant 0 : index
    %c0_23 = arith.constant 0 : index
    %c0_24 = arith.constant 0 : index
    %c0_25 = arith.constant 0 : index
    %26 = vector.load %arg9[%c0_22, %c0_23, %c0_24, %c0_25] : memref<1x1x64x1xf32, #tpu.memory_space<vmem>>, vector<1x1x64x1xf32>
    %27 = arith.mulf %15, %15 : vector<64x16xf32>
    %cst_26 = arith.constant dense<0.000000e+00> : vector<64xf32>
    %28 = vector.multi_reduction <add>, %27, %cst_26 [1] : vector<64x16xf32> to vector<64xf32>
    %29 = vector.shape_cast %28 : vector<64xf32> to vector<64x1xf32>
    %30 = vector.shape_cast %29 : vector<64x1xf32> to vector<1x1x64x1xf32>
    %31 = arith.addf %26, %30 : vector<1x1x64x1xf32>
    %c0_27 = arith.constant 0 : index
    %c0_28 = arith.constant 0 : index
    %c0_29 = arith.constant 0 : index
    %c0_30 = arith.constant 0 : index
    %32 = vector.load %arg9[%c0_27, %c0_28, %c0_29, %c0_30] : memref<1x1x64x1xf32, #tpu.memory_space<vmem>>, vector<1x1x64x1xf32>
    tpu.vector_store %arg9[%c0_27, %c0_28, %c0_29, %c0_30], %31 {strides = array<i32>} : memref<1x1x64x1xf32, #tpu.memory_space<vmem>>, vector<1x1x64x1xf32>,
    return
  }
  func.func @transform_0(%arg0: i32, %arg1: i32, %arg2: i32) -> (i32, i32, i32) {
    %c1_i32 = arith.constant 1 : i32
    %0 = arith.muli %arg1, %c1_i32 : i32
    %1 = arith.addi %0, %arg2 : i32
    %c0_i32 = arith.constant 0 : i32
    %c0_i32_0 = arith.constant 0 : i32
    return %arg0, %c0_i32, %1 : i32, i32, i32
  }
  func.func @transform_1(%arg0: i32, %arg1: i32, %arg2: i32) -> (i32, i32) {
    %c0_i32 = arith.constant 0 : i32
    %c0_i32_0 = arith.constant 0 : i32
    %c0_i32_1 = arith.constant 0 : i32
    return %c0_i32, %c0_i32_0 : i32, i32
  }
  func.func @transform_2(%arg0: i32, %arg1: i32, %arg2: i32) -> (i32, i32) {
    %c0_i32 = arith.constant 0 : i32
    %c0_i32_0 = arith.constant 0 : i32
    %c0_i32_1 = arith.constant 0 : i32
    return %c0_i32, %c0_i32_0 : i32, i32
  }
  func.func @transform_3(%arg0: i32, %arg1: i32, %arg2: i32) -> (i32, i32) {
    %c0_i32 = arith.constant 0 : i32
    %c0_i32_0 = arith.constant 0 : i32
    %c0_i32_1 = arith.constant 0 : i32
    return %c0_i32, %c0_i32_0 : i32, i32
  }
  func.func @transform_4(%arg0: i32, %arg1: i32, %arg2: i32) -> (i32, i32, i32) {
    %c1_i32 = arith.constant 1 : i32
    %0 = arith.muli %arg1, %c1_i32 : i32
    %1 = arith.addi %0, %arg2 : i32
    %c0_i32 = arith.constant 0 : i32
    %c0_i32_0 = arith.constant 0 : i32
    return %arg0, %c0_i32, %1 : i32, i32, i32
  }
  func.func @transform_5(%arg0: i32, %arg1: i32, %arg2: i32) -> (i32, i32, i32, i32) {
    %c0_i32 = arith.constant 0 : i32
    %c0_i32_0 = arith.constant 0 : i32
    %c0_i32_1 = arith.constant 0 : i32
    return %arg0, %arg1, %c0_i32, %c0_i32_0 : i32, i32, i32, i32
  }
  func.func @transform_6(%arg0: i32, %arg1: i32, %arg2: i32) -> (i32, i32, i32, i32) {
    %c0_i32 = arith.constant 0 : i32
    %c0_i32_0 = arith.constant 0 : i32
    %c0_i32_1 = arith.constant 0 : i32
    return %arg0, %arg1, %c0_i32, %c0_i32_0 : i32, i32, i32, i32
  }
}

module attributes {stable_mosaic.version = 11 : i64} {
  func.func @_apply_kernel(%arg0: i32, %arg1: i32, %arg2: memref<1x64x16xbf16, #tpu.memory_space<vmem>>, %arg3: memref<64x1xf32, #tpu.memory_space<vmem>>, %arg4: memref<64x1xf32, #tpu.memory_space<vmem>>, %arg5: memref<1x64x16xf32, #tpu.memory_space<vmem>>) attributes {dimension_semantics = [#tpu.dimension_semantics<parallel>, #tpu.dimension_semantics<parallel>], iteration_bounds = array<i64: 2, 1>, scalar_prefetch = 0 : i64, scratch_operands = 0 : i64, tpu.core_type = #tpu.core_type<tc>, window_params = [{transform_indices = @transform_0, window_bounds = array<i64: 1, 64, 16>}, {pipeline_mode = #tpu.pipeline_mode<synchronous>, transform_indices = @transform_1, window_bounds = array<i64: 64, 1>}, {pipeline_mode = #tpu.pipeline_mode<synchronous>, transform_indices = @transform_2, window_bounds = array<i64: 64, 1>}, {transform_indices = @transform_3, window_bounds = array<i64: 1, 64, 16>}]} {
    %c0 = arith.constant 0 : index
    %c0_0 = arith.constant 0 : index
    %c0_1 = arith.constant 0 : index
    %0 = vector.load %arg2[%c0, %c0_0, %c0_1] : memref<1x64x16xbf16, #tpu.memory_space<vmem>>, vector<1x64x16xbf16>
    %1 = vector.shape_cast %0 : vector<1x64x16xbf16> to vector<64x16xbf16>
    %2 = arith.extf %1 : vector<64x16xbf16> to vector<64x16xf32>
    %c0_2 = arith.constant 0 : index
    %c0_3 = arith.constant 0 : index
    %3 = vector.load %arg3[%c0_2, %c0_3] : memref<64x1xf32, #tpu.memory_space<vmem>>, vector<64x1xf32>
    %4 = vector.broadcast %3 : vector<64x1xf32> to vector<64x16xf32>
    %5 = arith.mulf %2, %4 : vector<64x16xf32>
    %c0_4 = arith.constant 0 : index
    %c0_5 = arith.constant 0 : index
    %6 = vector.load %arg4[%c0_4, %c0_5] : memref<64x1xf32, #tpu.memory_space<vmem>>, vector<64x1xf32>
    %7 = vector.broadcast %6 : vector<64x1xf32> to vector<64x16xf32>
    %8 = arith.addf %5, %7 : vector<64x16xf32>
    %cst = arith.constant 0.000000e+00 : f32
    %9 = vector.broadcast %cst : f32 to vector<64x16xf32>
    %10 = arith.maximumf %8, %9 : vector<64x16xf32>
    %c0_6 = arith.constant 0 : index
    %c0_7 = arith.constant 0 : index
    %c0_8 = arith.constant 0 : index
    %11 = vector.load %arg5[%c0_6, %c0_7, %c0_8] : memref<1x64x16xf32, #tpu.memory_space<vmem>>, vector<1x64x16xf32>
    %12 = vector.shape_cast %11 : vector<1x64x16xf32> to vector<64x16xf32>
    %13 = vector.shape_cast %10 : vector<64x16xf32> to vector<1x64x16xf32>
    tpu.vector_store %arg5[%c0_6, %c0_7, %c0_8], %13 {strides = array<i32>} : memref<1x64x16xf32, #tpu.memory_space<vmem>>, vector<1x64x16xf32>,
    return
  }
  func.func @transform_0(%arg0: i32, %arg1: i32) -> (i32, i32, i32) {
    %c0_i32 = arith.constant 0 : i32
    %c0_i32_0 = arith.constant 0 : i32
    return %arg0, %c0_i32, %arg1 : i32, i32, i32
  }
  func.func @transform_1(%arg0: i32, %arg1: i32) -> (i32, i32) {
    %c0_i32 = arith.constant 0 : i32
    %c0_i32_0 = arith.constant 0 : i32
    %c0_i32_1 = arith.constant 0 : i32
    return %c0_i32, %c0_i32_0 : i32, i32
  }
  func.func @transform_2(%arg0: i32, %arg1: i32) -> (i32, i32) {
    %c0_i32 = arith.constant 0 : i32
    %c0_i32_0 = arith.constant 0 : i32
    %c0_i32_1 = arith.constant 0 : i32
    return %c0_i32, %c0_i32_0 : i32, i32
  }
  func.func @transform_3(%arg0: i32, %arg1: i32) -> (i32, i32, i32) {
    %c0_i32 = arith.constant 0 : i32
    %c0_i32_0 = arith.constant 0 : i32
    return %arg0, %c0_i32, %arg1 : i32, i32, i32
  }
}

</mosaic_0001>

<bundles_post_ra>
// kernel: pointnet_cloud_encoder.4
= control target key start
LH: loop header
LB: loop body
LE: loop exit
PB: predicated region body
PF: predicated region fallthrough
CT: control target
= control target key end

     0   :  { %s761_s15 = smov 0   ;;  %s763_s16 = smov 0   ;;  %s859_s0 = inlined_call_operand.vmem [shape: f32[2,4,16], index: 0, kind: input, shape index: {}]   ;;  %s860_s1 = inlined_call_operand.vmem [shape: f32[32,4], index: 1, kind: input, shape index: {}]   ;;  %s861_s2 = inlined_call_operand.vmem [shape: bf16[2,32,16], index: 2, kind: output, shape index: {0}]   ;;  %s862_s3 = inlined_call_operand.vmem [shape: f32[2,1,4,1], index: 3, kind: output, shape index: {1}]   ;;  %s863_s4 = inlined_call_operand.vmem [shape: f32[2,1,32,1], index: 4, kind: output, shape index: {2}]  }
   0x1   :  { %s765_s17 = smov 0  }
   0x2 LB: > { %s34_s18 = sadd.s32 1, %s729_s16  ;;  %p647_p0 = scmp.ge.s32.totalorder %s733_s17, 1  ;;  %s733_s17 = sphi %s765_s17, %s15_s17   ;;  %s729_s16 = sphi %s763_s16, %s865_s16   ;;  %s725_s15 = sphi %s761_s15, %s864_s15  }
   0x3   : > { %p36_p1 = scmp.ge.s32.totalorder %s34_s18, 2  ;;  %p202_p2 = scmp.lt.s32.totalorder %s733_s17, 3 }
   0x5   : > { %s867_s18 = smov (%p36_p1, %s34_s18), 0  ;;  %p203_p3 = pnand %p647_p0, %p202_p2 }
   0x6   : > { %p252_p4 = scmp.lt.s32.totalorder (!%p203_p3), %s725_s15, 1 }
   0x7   : > { %206 = sbr.rel (%p203_p3) target bundleno = 361 (0x169), region = 28 }
   0xc   : > { %v298_v0 = vld [vmem:[%s860_s1] sm:$0xff]  ;;  %vm302_vm0 = vcmask 31744   ;;  %v300_v1 = vld [vmem:[%s860_s1 + $0x10] sm:$0xff]  ;;  %s869_s15 = smov (!%p252_p4, %s725_s15), 1  ;;  %vm315_vm1 = vcmask 1043456   ;;  %v299_v3 = vld [vmem:[%s860_s1 + $0x8] sm:$0xff] }
   0xd   : > { %678 = vmatprep.mubr.msk.f32.mxu0 %vm302_vm0, %v298_v0  ;;  %681 = vmatprep.mubr.msk.f32.mxu1 %vm302_vm0, %v300_v1  ;;  %s648_s23 = sshll.u32 %s869_s15, 2  ;;  %v301_v4 = vld [vmem:[%s860_s1 + $0x18] sm:$0xff]  ;;  %vm420_vm2 = vcmask 125952   ;;  %s666_s5 = sshll.u32 %s869_s15, 5  ;;  %vm290_vm3 = vcmask 3072   ;;  %v735_v6 = vmov 0.0  }
   0xe   : > { %s258_s26 = scalar_lea.vmem %s859_s0, %s648_s23  ;;  %s806_s8 = scalar_lea.vmem %s862_s3, %s648_s23  ;;  %vm292_vm4 = vcmask 7168   ;;  %vm440_vm5 = vcmask 130048  }
   0xf   : > { %v297_v2 = vld [vmem:[%s258_s26] sm:$0xf]  ;;  %291 = vst.msk [vmem:[%s806_s8] sm:$0xf] %vm290_vm3, %v735_v6  ;;  %s813_s11 = scalar_lea.vmem %s863_s4, %s666_s5  ;;  %s665_s12 = sshll.u32 %s869_s15, 4 }
  0x10   : > { %676 = vmatprep.subr.msk.mxu0 %vm315_vm1, %v297_v2  ;;  %684 = vmatprep.subr.msk.mxu1 %vm315_vm1, %v297_v2  ;;  %v426_v5 = vsel %vm420_vm2, %v297_v2, 0.0  ;;  %294 = vst.msk [vmem:[%s813_s11 + $0x8] sm:$0xff] %vm292_vm4, %v735_v6  ;;  %293 = vst.msk [vmem:[%s813_s11] sm:$0xff] %vm292_vm4, %v735_v6  ;;  %s268_s19 = scalar_lea.vmem %s861_s2, %s665_s12 }
  0x11   : > { %677 = vmatpush3.msk.msra.mxu0 %vm315_vm1, %v297_v2  ;;  %685 = vmatpush3.msk.msra.mxu1 %vm315_vm1, %v297_v2  ;;  %295 = vst.msk [vmem:[%s813_s11 + $0x10] sm:$0xff] %vm292_vm4, %v735_v6  ;;  %296 = vst.msk [vmem:[%s813_s11 + $0x18] sm:$0xff] %vm292_vm4, %v735_v6 }
  0x12   : > { %679 = vmatmul.mubr.msk.f32.vlgmr.msra.gmra.mxu0 %vm302_vm0, %v299_v3  ;;  %682 = vmatmul.mubr.msk.f32.vlgmr.msra.gmra.mxu1 %vm302_vm0, %v301_v4 }
  0x13   : > { %427 = vadd.xlane.f32.xlu0 %v426_v5 }
  0x16   : > { %v425_v23 = vld [vmem:[%s806_s8] sm:$0xf] }
  0x17   : > { %v433_v26 = vld [vmem:[%s813_s11 + $0x8] sm:$0xff]  ;;  %v432_v27 = vld [vmem:[%s813_s11] sm:$0xff] }
  0x18   : > { %v434_v32 = vld [vmem:[%s813_s11 + $0x10] sm:$0xff]  ;;  %v435_v33 = vld [vmem:[%s813_s11 + $0x18] sm:$0xff] }
  0x9c   : > { %v428_v24 = vpop.xlane.xlu0 %427 }
  0x9d   : > { %v429_v25 = vadd.f32 %v428_v24, %v425_v23 }
  0x9f   : > { %431 = vst.msk [vmem:[%s806_s8] sm:$0xf] %vm290_vm3, %v429_v25 }
  0xd2   : > { %v680_v7 = vpop.f32.mrf.mxu0  ;;  %v683_v8 = vpop.f32.mrf.mxu1 }
  0xd3   : > { %v668_v9 = vpack.c.bf16 %v680_v7, %v680_v7  ;;  %v670_v10 = vpack.c.bf16 %v683_v8, %v683_v8  ;;  %v437_v11 = vmul.f32 %v680_v7, %v680_v7  ;;  %v439_v19 = vmul.f32 %v683_v8, %v683_v8 }
  0xd4   : > { %v385_v12 = vpop.f32.mrf.mxu0  ;;  %v395_v13 = vpop.f32.mrf.mxu1 }
  0xd5   : > { %422 = vst.msk [vmem:[%s268_s19 + $0x4] sm:$0xf] %vm420_vm2, %v668_v9  ;;  %v667_v14 = vpack.c.bf16 %v385_v12, %v385_v12  ;;  %v436_v15 = vmul.f32 %v385_v12, %v385_v12  ;;  %424 = vst.msk [vmem:[%s268_s19 + $0xc] sm:$0xf] %vm420_vm2, %v670_v10  ;;  %v669_v16 = vpack.c.bf16 %v395_v13, %v395_v13  ;;  %v444_v18 = vsel %vm440_vm5, %v437_v11, 0.0 }
  0xd6   : > { %v438_v17 = vmul.f32 %v395_v13, %v395_v13  ;;  %445 = vadd.xlane.f32.xlu1 %v444_v18  ;;  %v450_v22 = vsel %vm440_vm5, %v439_v19, 0.0 }
  0xd7   : > { %421 = vst.msk [vmem:[%s268_s19] sm:$0xf] %vm420_vm2, %v667_v14  ;;  %423 = vst.msk [vmem:[%s268_s19 + $0x8] sm:$0xf] %vm420_vm2, %v669_v16  ;;  %v441_v20 = vsel %vm440_vm5, %v436_v15, 0.0 }
  0xd8   : > { %442 = vadd.xlane.f32.xlu0 %v441_v20  ;;  %v447_v21 = vsel %vm440_vm5, %v438_v17, 0.0 }
  0xda   : > { %448 = vadd.xlane.f32.xlu1 %v447_v21 }
  0xdc   : > { %451 = vadd.xlane.f32.xlu0 %v450_v22 }
 0x15f   : > { %v446_v28 = vpop.xlane.xlu1 %445 }
 0x160   : > { %v454_v29 = vadd.f32 %v446_v28, %v433_v26 }
 0x161   : > { %v443_v30 = vpop.xlane.xlu0 %442 }
 0x162   : > { %v453_v31 = vadd.f32 %v443_v30, %v432_v27  ;;  %459 = vst.msk [vmem:[%s813_s11 + $0x8] sm:$0xff] %vm292_vm4, %v454_v29 }
 0x163   : > { %v449_v34 = vpop.xlane.xlu1 %448 }
 0x164   : > { %458 = vst.msk [vmem:[%s813_s11] sm:$0xff] %vm292_vm4, %v453_v31  ;;  %v455_v35 = vadd.f32 %v449_v34, %v434_v32 }
 0x165   : > { %v452_v36 = vpop.xlane.xlu0 %451 }
 0x166   : > { %v456_v37 = vadd.f32 %v452_v36, %v435_v33  ;;  %460 = vst.msk [vmem:[%s813_s11 + $0x10] sm:$0xff] %vm292_vm4, %v455_v35 }
 0x168   : > { %461 = vst.msk [vmem:[%s813_s11 + $0x18] sm:$0xff] %vm292_vm4, %v456_v37 }
 0x169 PF: > { %s15_s17 = sadd.s32 1, %s733_s17   ;;  %s864_s15 = smov %s729_s16 }
 0x16a   : > { %p12_p5 = scmp.ge.s32.totalorder %s15_s17, 4   ;;  %s865_s16 = smov %s867_s18 }
 0x16c   :  { %14 = sbr.rel (!%p12_p5) target bundleno = 2 (0x2), region = 86 }

// kernel: pointnet_cloud_encoder.5
= control target key start
LH: loop header
LB: loop body
LE: loop exit
PB: predicated region body
PF: predicated region fallthrough
CT: control target
= control target key end

     0   :  { %s960_s21 = smov 0   ;;  %s962_s22 = smov 0   ;;  %s1103_s0 = inlined_call_operand.vmem [shape: bf16[2,32,16], index: 0, kind: input, shape index: {}]   ;;  %s1104_s1 = inlined_call_operand.vmem [shape: f32[32,32], index: 1, kind: input, shape index: {}]   ;;  %s1105_s2 = inlined_call_operand.vmem [shape: f32[32,1], index: 2, kind: input, shape index: {}]   ;;  %s1106_s3 = inlined_call_operand.vmem [shape: f32[32,1], index: 3, kind: input, shape index: {}]   ;;  %s1107_s4 = inlined_call_operand.vmem [shape: bf16[2,32,16], index: 4, kind: output, shape index: {0}]   ;;  %s1108_s5 = inlined_call_operand.vmem [shape: f32[2,1,32,1], index: 5, kind: output, shape index: {1}]   ;;  %s1109_s6 = inlined_call_operand.vmem [shape: f32[2,1,32,1], index: 6, kind: output, shape index: {2}]  }
   0x1   :  { %s964_s23 = smov 0  }
   0x2 LB: > { %s36_s24 = sadd.s32 1, %s917_s22  ;;  %p805_p0 = scmp.ge.s32.totalorder %s921_s23, 1  ;;  %s921_s23 = sphi %s964_s23, %s17_s23   ;;  %s917_s22 = sphi %s962_s22, %s1111_s22   ;;  %s913_s21 = sphi %s960_s21, %s1110_s21  }
   0x3   : > { %p38_p1 = scmp.ge.s32.totalorder %s36_s24, 2  ;;  %p253_p2 = scmp.lt.s32.totalorder %s921_s23, 3 }
   0x5   : > { %s1113_s24 = smov (%p38_p1, %s36_s24), 0  ;;  %p254_p3 = pnand %p805_p0, %p253_p2 }
   0x6   : > { %p310_p4 = scmp.lt.s32.totalorder (!%p254_p3), %s913_s21, 1 }
   0x7   : > { %257 = sbr.rel (%p254_p3) target bundleno = 502 (0x1f6), region = 36 }
   0xc   : > { %v399_v0 = vld [vmem:[%s1106_s3 + $0x18] sm:$0xff]  ;;  %v923_v2 = vmov 0   ;;  %v370_v3 = vld [vmem:[%s1105_s2 + $0x10] sm:$0xff]  ;;  %v369_v4 = vld [vmem:[%s1105_s2 + $0x8] sm:$0xff]  ;;  %s1115_s21 = smov (!%p310_p4, %s913_s21), 1  ;;  %vm432_vm0 = vcmask 261120  }
   0xd   : > { %v371_v1 = vld [vmem:[%s1105_s2 + $0x18] sm:$0xff]  ;;  %898 = vset.pattern.permute.xlu1 %v923_v2  ;;  %897 = vset.pattern.permute.xlu0 %v923_v2  ;;  %v398_v5 = vld [vmem:[%s1106_s3 + $0x10] sm:$0xff]  ;;  %v368_v6 = vld [vmem:[%s1105_s2] sm:$0xff]  ;;  %s826_s19 = sshll.u32 %s1115_s21, 5  ;;  %vm351_vm1 = vcmask 7168   ;;  %v924_v11 = vmov 0.0  }
   0xe   : > { %417 = vperm.xlu1 %898, %v399_v0   ;;  %389 = vperm.xlu0 %897, %v371_v1   ;;  %v397_v7 = vld [vmem:[%s1106_s3 + $0x8] sm:$0xff]  ;;  %v396_v8 = vld [vmem:[%s1106_s3] sm:$0xff]  ;;  %v430_v10 = vld [vmem:[%s1104_s1 + $0x10] sm:$0xff]  ;;  %s1020_s28 = scalar_lea.vmem %s1108_s5, %s826_s19  ;;  %s1025_s7 = scalar_lea.vmem %s1109_s6, %s826_s19  ;;  %vm555_vm2 = vcmask 130048   ;;  %vm546_vm3 = vcmask 125952  }
   0xf   : > { %v428_v9 = vld [vmem:[%s1104_s1] sm:$0xff]  ;;  %860 = vmatprep.mubr.msk.f32.mxu1 %vm432_vm0, %v430_v10  ;;  %353 = vst.msk [vmem:[%s1020_s28 + $0x8] sm:$0xff] %vm351_vm1, %v924_v11  ;;  %352 = vst.msk [vmem:[%s1020_s28] sm:$0xff] %vm351_vm1, %v924_v11  ;;  %s824_s8 = sshll.u32 %s1115_s21, 4  ;;  %v429_v40 = vld [vmem:[%s1104_s1 + $0x8] sm:$0xff] }
  0x10   : > { %857 = vmatprep.mubr.msk.f32.mxu0 %vm432_vm0, %v428_v9  ;;  %354 = vst.msk [vmem:[%s1020_s28 + $0x10] sm:$0xff] %vm351_vm1, %v924_v11  ;;  %355 = vst.msk [vmem:[%s1020_s28 + $0x18] sm:$0xff] %vm351_vm1, %v924_v11  ;;  %s317_s11 = scalar_lea.vmem %s1103_s0, %s824_s8  ;;  %v431_v41 = vld [vmem:[%s1104_s1 + $0x18] sm:$0xff]  ;;  %s327_s18 = scalar_lea.vmem %s1107_s4, %s824_s8 }
  0x11   : > { %356 = vst.msk [vmem:[%s1025_s7] sm:$0xff] %vm351_vm1, %v924_v11  ;;  %357 = vst.msk [vmem:[%s1025_s7 + $0x8] sm:$0xff] %vm351_vm1, %v924_v11  ;;  %v840_v12 = vld [vmem:[%s317_s11 + $0x8] sm:$0xff]   ;;  %v833_v21 = vld [vmem:[%s317_s11] sm:$0xff]  }
  0x12   : > { %384 = vperm.xlu0 %897, %v370_v3   ;;  %379 = vperm.xlu1 %898, %v369_v4   ;;  %358 = vst.msk [vmem:[%s1025_s7 + $0x10] sm:$0xff] %vm351_vm1, %v924_v11  ;;  %359 = vst.msk [vmem:[%s1025_s7 + $0x18] sm:$0xff] %vm351_vm1, %v924_v11  ;;  %v839_v13 = vunpack.c.h.bf16 %v840_v12  ;;  %v838_v18 = vunpack.c.l.bf16 %v840_v12  ;;  %v835_v24 = vunpack.c.h.bf16 %v833_v21  ;;  %v834_v25 = vunpack.c.l.bf16 %v833_v21 }
  0x16   : > { %412 = vperm.xlu0 %897, %v398_v5   ;;  %374 = vperm.xlu1 %898, %v368_v6   ;;  %v552_v44 = vld [vmem:[%s1020_s28 + $0x8] sm:$0xff]  ;;  %v551_v45 = vld [vmem:[%s1020_s28] sm:$0xff] }
  0x17   : > { %v553_v50 = vld [vmem:[%s1020_s28 + $0x10] sm:$0xff]  ;;  %v554_v53 = vld [vmem:[%s1020_s28 + $0x18] sm:$0xff] }
  0x18   : > { %v577_v9 = vld [vmem:[%s1025_s7] sm:$0xff] }
  0x1a   : > { %407 = vperm.xlu0 %897, %v397_v7   ;;  %402 = vperm.xlu1 %898, %v396_v8   ;;  %v578_v8 = vld [vmem:[%s1025_s7 + $0x8] sm:$0xff] }
  0x89   : > { %v418_v14 = vpop.permute.xlu1 %417  ;;  %v390_v15 = vpop.permute.xlu0 %389 }
  0x8a   : > { %v395_v16 = vmul.f32 %v839_v13, %v390_v15  ;;  %v579_v15 = vld [vmem:[%s1025_s7 + $0x10] sm:$0xff] }
  0x8c   : > { %v423_v17 = vadd.f32 %v418_v14, %v395_v16  ;;  %v580_v14 = vld [vmem:[%s1025_s7 + $0x18] sm:$0xff] }
  0x8d   : > { %v385_v19 = vpop.permute.xlu0 %384  ;;  %v380_v20 = vpop.permute.xlu1 %379 }
  0x8e   : > { %v427_v22 = vmax.f32 %v423_v17, 0.0  ;;  %v394_v23 = vmul.f32 %v838_v18, %v385_v19  ;;  %v393_v29 = vmul.f32 %v835_v24, %v380_v20 }
  0x90   : > { %849 = vmatprep.subr.mxu0 %v427_v22  ;;  %863 = vmatprep.subr.mxu1 %v427_v22  ;;  %v565_v43 = vsel %vm555_vm2, %v427_v22, 0.0 }
  0x91   : > { %v413_v26 = vpop.permute.xlu0 %412  ;;  %v375_v27 = vpop.permute.xlu1 %374  ;;  %850 = vmatpush3.msra.mxu0 %v427_v22  ;;  %867 = vmatpush3.msra.mxu1 %v427_v22 }
  0x92   : > { %v422_v28 = vadd.f32 %v413_v26, %v394_v23  ;;  %v392_v31 = vmul.f32 %v834_v25, %v375_v27 }
  0x94   : > { %v426_v30 = vmax.f32 %v422_v28, 0.0 }
  0x95   : > { %v408_v32 = vpop.permute.xlu0 %407  ;;  %v403_v33 = vpop.permute.xlu1 %402 }
  0x96   : > { %v421_v34 = vadd.f32 %v408_v32, %v393_v29  ;;  %v420_v35 = vadd.f32 %v403_v33, %v392_v31  ;;  %851 = vmatprep.subr.mxu0 %v426_v30  ;;  %864 = vmatprep.subr.mxu1 %v426_v30  ;;  %v562_v42 = vsel %vm555_vm2, %v426_v30, 0.0 }
  0x97   : > { %852 = vmatpush3.msra.mxu0 %v426_v30  ;;  %868 = vmatpush3.msra.mxu1 %v426_v30 }
  0x98   : > { %v425_v36 = vmax.f32 %v421_v34, 0.0  ;;  %v424_v37 = vmax.f32 %v420_v35, 0.0 }
  0x9a   : > { %853 = vmatprep.subr.mxu0 %v425_v36  ;;  %865 = vmatprep.subr.mxu1 %v425_v36  ;;  %v559_v38 = vsel %vm555_vm2, %v425_v36, 0.0  ;;  %v556_v39 = vsel %vm555_vm2, %v424_v37, 0.0 }
  0x9b   : > { %560 = vadd.xlane.f32.xlu1 %v559_v38  ;;  %854 = vmatpush3.msra.mxu0 %v425_v36 }
  0x9c   : > { %869 = vmatpush3.msra.mxu1 %v425_v36  ;;  %557 = vadd.xlane.f32.xlu0 %v556_v39 }
  0x9d   : > { %855 = vmatprep.subr.mxu0 %v424_v37  ;;  %866 = vmatprep.subr.mxu1 %v424_v37 }
  0x9e   : > { %856 = vmatpush3.msra.mxu0 %v424_v37  ;;  %870 = vmatpush3.msra.mxu1 %v424_v37 }
  0x9f   : > { %858 = vmatmul.mubr.msk.f32.vlgmr.msra.gmra.mxu0 %vm432_vm0, %v429_v40  ;;  %861 = vmatmul.mubr.msk.f32.vlgmr.msra.gmra.mxu1 %vm432_vm0, %v431_v41 }
  0xa0   : > { %563 = vadd.xlane.f32.xlu0 %v562_v42 }
  0xa4   : > { %566 = vadd.xlane.f32.xlu0 %v565_v43 }
 0x124   : > { %v561_v46 = vpop.xlane.xlu1 %560 }
 0x125   : > { %v569_v47 = vadd.f32 %v561_v46, %v552_v44  ;;  %v558_v48 = vpop.xlane.xlu0 %557 }
 0x126   : > { %v568_v49 = vadd.f32 %v558_v48, %v551_v45 }
 0x127   : > { %574 = vst.msk [vmem:[%s1020_s28 + $0x8] sm:$0xff] %vm351_vm1, %v569_v47 }
 0x128   : > { %573 = vst.msk [vmem:[%s1020_s28] sm:$0xff] %vm351_vm1, %v568_v49 }
 0x129   : > { %v564_v51 = vpop.xlane.xlu0 %563 }
 0x12a   : > { %v570_v52 = vadd.f32 %v564_v51, %v553_v50 }
 0x12c   : > { %575 = vst.msk [vmem:[%s1020_s28 + $0x10] sm:$0xff] %vm351_vm1, %v570_v52 }
 0x12d   : > { %v567_v54 = vpop.xlane.xlu0 %566 }
 0x12e   : > { %v571_v55 = vadd.f32 %v567_v54, %v554_v53 }
 0x130   : > { %576 = vst.msk [vmem:[%s1020_s28 + $0x18] sm:$0xff] %vm351_vm1, %v571_v55 }
 0x15f   : > { %v859_v56 = vpop.f32.mrf.mxu0  ;;  %v862_v57 = vpop.f32.mrf.mxu1 }
 0x160   : > { %v829_v58 = vpack.c.bf16 %v859_v56, %v859_v56  ;;  %v582_v59 = vmul.f32 %v859_v56, %v859_v56  ;;  %v831_v60 = vpack.c.bf16 %v862_v57, %v862_v57  ;;  %v584_v62 = vmul.f32 %v862_v57, %v862_v57 }
 0x161   : > { %v511_v61 = vpop.f32.mrf.mxu0  ;;  %v521_v63 = vpop.f32.mrf.mxu1 }
 0x162   : > { %548 = vst.msk [vmem:[%s327_s18 + $0x4] sm:$0xf] %vm546_vm3, %v829_v58  ;;  %v828_v0 = vpack.c.bf16 %v511_v61, %v511_v61  ;;  %v581_v1 = vmul.f32 %v511_v61, %v511_v61  ;;  %550 = vst.msk [vmem:[%s327_s18 + $0xc] sm:$0xf] %vm546_vm3, %v831_v60  ;;  %v830_v2 = vpack.c.bf16 %v521_v63, %v521_v63  ;;  %v588_v3 = vsel %vm555_vm2, %v582_v59, 0.0 }
 0x163   : > { %v583_v4 = vmul.f32 %v521_v63, %v521_v63  ;;  %589 = vadd.xlane.f32.xlu0 %v588_v3  ;;  %v594_v6 = vsel %vm555_vm2, %v584_v62, 0.0 }
 0x164   : > { %547 = vst.msk [vmem:[%s327_s18] sm:$0xf] %vm546_vm3, %v828_v0  ;;  %549 = vst.msk [vmem:[%s327_s18 + $0x8] sm:$0xf] %vm546_vm3, %v830_v2  ;;  %v585_v5 = vsel %vm555_vm2, %v581_v1, 0.0 }
 0x165   : > { %586 = vadd.xlane.f32.xlu1 %v585_v5  ;;  %v591_v7 = vsel %vm555_vm2, %v583_v4, 0.0 }
 0x167   : > { %595 = vadd.xlane.f32.xlu0 %v594_v6 }
 0x169   : > { %592 = vadd.xlane.f32.xlu1 %v591_v7 }
 0x1ec   : > { %v590_v10 = vpop.xlane.xlu0 %589 }
 0x1ed   : > { %v598_v11 = vadd.f32 %v590_v10, %v578_v8 }
 0x1ee   : > { %v587_v12 = vpop.xlane.xlu1 %586 }
 0x1ef   : > { %v597_v13 = vadd.f32 %v587_v12, %v577_v9  ;;  %602 = vst.msk [vmem:[%s1025_s7 + $0x8] sm:$0xff] %vm351_vm1, %v598_v11 }
 0x1f0   : > { %v596_v16 = vpop.xlane.xlu0 %595 }
 0x1f1   : > { %601 = vst.msk [vmem:[%s1025_s7] sm:$0xff] %vm351_vm1, %v597_v13  ;;  %v600_v17 = vadd.f32 %v596_v16, %v580_v14 }
 0x1f2   : > { %v593_v18 = vpop.xlane.xlu1 %592 }
 0x1f3   : > { %v599_v19 = vadd.f32 %v593_v18, %v579_v15  ;;  %604 = vst.msk [vmem:[%s1025_s7 + $0x18] sm:$0xff] %vm351_vm1, %v600_v17 }
 0x1f5   : > { %603 = vst.msk [vmem:[%s1025_s7 + $0x10] sm:$0xff] %vm351_vm1, %v599_v19 }
 0x1f6 PF: > { %s17_s23 = sadd.s32 1, %s921_s23   ;;  %s1110_s21 = smov %s917_s22 }
 0x1f7   : > { %p14_p5 = scmp.ge.s32.totalorder %s17_s23, 4   ;;  %s1111_s22 = smov %s1113_s24 }
 0x1f9   :  { %16 = sbr.rel (!%p14_p5) target bundleno = 2 (0x2), region = 94 }

// kernel: pointnet_cloud_encoder.6
= control target key start
LH: loop header
LB: loop body
LE: loop exit
PB: predicated region body
PF: predicated region fallthrough
CT: control target
= control target key end

     0   :  { %s1070_s21 = smov 0   ;;  %s1072_s22 = smov 0   ;;  %s1272_s0 = inlined_call_operand.vmem [shape: bf16[2,32,16], index: 0, kind: input, shape index: {}]   ;;  %s1273_s1 = inlined_call_operand.vmem [shape: f32[64,32], index: 1, kind: input, shape index: {}]   ;;  %s1274_s2 = inlined_call_operand.vmem [shape: f32[32,1], index: 2, kind: input, shape index: {}]   ;;  %s1275_s3 = inlined_call_operand.vmem [shape: f32[32,1], index: 3, kind: input, shape index: {}]   ;;  %s1276_s4 = inlined_call_operand.vmem [shape: bf16[2,64,16], index: 4, kind: output, shape index: {0}]   ;;  %s1277_s5 = inlined_call_operand.vmem [shape: f32[2,1,32,1], index: 5, kind: output, shape index: {1}]   ;;  %s1278_s6 = inlined_call_operand.vmem [shape: f32[2,1,64,1], index: 6, kind: output, shape index: {2}]  }
   0x1   :  { %s1074_s23 = smov 0  }
   0x2 LB: > { %s36_s24 = sadd.s32 1, %s1027_s22  ;;  %p893_p0 = scmp.ge.s32.totalorder %s1031_s23, 1  ;;  %s1031_s23 = sphi %s1074_s23, %s17_s23   ;;  %s1027_s22 = sphi %s1072_s22, %s1280_s22   ;;  %s1023_s21 = sphi %s1070_s21, %s1279_s21  }
   0x3   : > { %p38_p1 = scmp.ge.s32.totalorder %s36_s24, 2  ;;  %p253_p2 = scmp.lt.s32.totalorder %s1031_s23, 3 }
   0x5   : > { %s1282_s24 = smov (%p38_p1, %s36_s24), 0  ;;  %p254_p3 = pnand %p893_p0, %p253_p2 }
   0x6   : > { %p310_p4 = scmp.lt.s32.totalorder (!%p254_p3), %s1023_s21, 1 }
   0x7   : > { %257 = sbr.rel (%p254_p3) target bundleno = 510 (0x1fe), region = 36 }
   0xc   : > { %v403_v0 = vld [vmem:[%s1275_s3 + $0x18] sm:$0xff]  ;;  %v1033_v2 = vmov 0   ;;  %v374_v3 = vld [vmem:[%s1274_s2 + $0x10] sm:$0xff]  ;;  %v373_v4 = vld [vmem:[%s1274_s2 + $0x8] sm:$0xff]  ;;  %s1284_s21 = smov (!%p310_p4, %s1023_s21), 1  ;;  %vm440_vm0 = vcmask 261120  }
   0xd   : > { %v375_v1 = vld [vmem:[%s1274_s2 + $0x18] sm:$0xff]  ;;  %1008 = vset.pattern.permute.xlu1 %v1033_v2  ;;  %1007 = vset.pattern.permute.xlu0 %v1033_v2  ;;  %v402_v5 = vld [vmem:[%s1275_s3 + $0x10] sm:$0xff]  ;;  %v372_v6 = vld [vmem:[%s1274_s2] sm:$0xff]  ;;  %s921_s19 = sshll.u32 %s1284_s21, 5  ;;  %s923_s20 = sshll.u32 %s1284_s21, 6  ;;  %vm351_vm1 = vcmask 7168  }
   0xe   : > { %421 = vperm.xlu1 %1008, %v403_v0   ;;  %393 = vperm.xlu0 %1007, %v375_v1   ;;  %v401_v7 = vld [vmem:[%s1275_s3 + $0x8] sm:$0xff]  ;;  %v400_v8 = vld [vmem:[%s1275_s3] sm:$0xff]  ;;  %s1133_s29 = scalar_lea.vmem %s1277_s5, %s921_s19  ;;  %s1138_s8 = scalar_lea.vmem %s1278_s6, %s923_s20  ;;  %v1034_v11 = vmov 0.0   ;;  %vm615_vm2 = vcmask 130048   ;;  %v434_v42 = vld [vmem:[%s1273_s1 + $0x10] sm:$0xff]  ;;  %vm602_vm3 = vcmask 125952  }
   0xf   : > { %v432_v9 = vld [vmem:[%s1273_s1] sm:$0xff]  ;;  %353 = vst.msk [vmem:[%s1133_s29 + $0x8] sm:$0xff] %vm351_vm1, %v1034_v11  ;;  %352 = vst.msk [vmem:[%s1133_s29] sm:$0xff] %vm351_vm1, %v1034_v11  ;;  %s920_s9 = sshll.u32 %s1284_s21, 4  ;;  %v433_v40 = vld [vmem:[%s1273_s1 + $0x8] sm:$0xff]  ;;  %s1213_s10 = scalar_lea.vmem %s1276_s4, %s921_s19 }
  0x10   : > { %961 = vmatprep.mubr.msk.f32.mxu0 %vm440_vm0, %v432_v9  ;;  %v436_v10 = vld [vmem:[%s1273_s1 + $0x20] sm:$0xff]  ;;  %354 = vst.msk [vmem:[%s1133_s29 + $0x10] sm:$0xff] %vm351_vm1, %v1034_v11  ;;  %355 = vst.msk [vmem:[%s1133_s29 + $0x18] sm:$0xff] %vm351_vm1, %v1034_v11  ;;  %s317_s12 = scalar_lea.vmem %s1272_s0, %s920_s9  ;;  %v437_v41 = vld [vmem:[%s1273_s1 + $0x28] sm:$0xff] }
  0x11   : > { %967 = vmatprep.mubr.msk.f32.mxu1 %vm440_vm0, %v436_v10  ;;  %356 = vst.msk [vmem:[%s1138_s8] sm:$0xff] %vm351_vm1, %v1034_v11  ;;  %357 = vst.msk [vmem:[%s1138_s8 + $0x8] sm:$0xff] %vm351_vm1, %v1034_v11  ;;  %v940_v12 = vld [vmem:[%s317_s12 + $0x8] sm:$0xff]   ;;  %v933_v21 = vld [vmem:[%s317_s12] sm:$0xff]  }
  0x12   : > { %388 = vperm.xlu0 %1007, %v374_v3   ;;  %383 = vperm.xlu1 %1008, %v373_v4   ;;  %358 = vst.msk [vmem:[%s1138_s8 + $0x10] sm:$0xff] %vm351_vm1, %v1034_v11  ;;  %359 = vst.msk [vmem:[%s1138_s8 + $0x18] sm:$0xff] %vm351_vm1, %v1034_v11  ;;  %v939_v13 = vunpack.c.h.bf16 %v940_v12  ;;  %v938_v18 = vunpack.c.l.bf16 %v940_v12  ;;  %v935_v24 = vunpack.c.h.bf16 %v933_v21  ;;  %v934_v25 = vunpack.c.l.bf16 %v933_v21  ;;  %v438_v43 = vld [vmem:[%s1273_s1 + $0x30] sm:$0xff]  ;;  %v435_v45 = vld [vmem:[%s1273_s1 + $0x18] sm:$0xff] }
  0x13   : > { %360 = vst.msk [vmem:[%s1138_s8 + $0x20] sm:$0xff] %vm351_vm1, %v1034_v11  ;;  %361 = vst.msk [vmem:[%s1138_s8 + $0x28] sm:$0xff] %vm351_vm1, %v1034_v11  ;;  %v439_v46 = vld [vmem:[%s1273_s1 + $0x38] sm:$0xff] }
  0x14   : > { %362 = vst.msk [vmem:[%s1138_s8 + $0x30] sm:$0xff] %vm351_vm1, %v1034_v11  ;;  %363 = vst.msk [vmem:[%s1138_s8 + $0x38] sm:$0xff] %vm351_vm1, %v1034_v11 }
  0x16   : > { %416 = vperm.xlu0 %1007, %v402_v5   ;;  %378 = vperm.xlu1 %1008, %v372_v6   ;;  %v612_v48 = vld [vmem:[%s1133_s29 + $0x8] sm:$0xff]  ;;  %v611_v49 = vld [vmem:[%s1133_s29] sm:$0xff] }
  0x17   : > { %v613_v54 = vld [vmem:[%s1133_s29 + $0x10] sm:$0xff]  ;;  %v614_v57 = vld [vmem:[%s1133_s29 + $0x18] sm:$0xff] }
  0x1a   : > { %411 = vperm.xlu0 %1007, %v401_v7   ;;  %406 = vperm.xlu1 %1008, %v400_v8  }
  0x89   : > { %v422_v14 = vpop.permute.xlu1 %421  ;;  %v394_v15 = vpop.permute.xlu0 %393 }
  0x8a   : > { %v399_v16 = vmul.f32 %v939_v13, %v394_v15 }
  0x8c   : > { %v427_v17 = vadd.f32 %v422_v14, %v399_v16 }
  0x8d   : > { %v389_v19 = vpop.permute.xlu0 %388  ;;  %v384_v20 = vpop.permute.xlu1 %383 }
  0x8e   : > { %v431_v22 = vmax.f32 %v427_v17, 0.0  ;;  %v398_v23 = vmul.f32 %v938_v18, %v389_v19  ;;  %v397_v29 = vmul.f32 %v935_v24, %v384_v20 }
  0x90   : > { %953 = vmatprep.subr.mxu0 %v431_v22  ;;  %973 = vmatprep.subr.mxu1 %v431_v22  ;;  %v625_v47 = vsel %vm615_vm2, %v431_v22, 0.0 }
  0x91   : > { %v417_v26 = vpop.permute.xlu0 %416  ;;  %v379_v27 = vpop.permute.xlu1 %378  ;;  %954 = vmatpush3.msra.mxu0 %v431_v22  ;;  %977 = vmatpush3.msra.mxu1 %v431_v22 }
  0x92   : > { %v426_v28 = vadd.f32 %v417_v26, %v398_v23  ;;  %v396_v31 = vmul.f32 %v934_v25, %v379_v27 }
  0x94   : > { %v430_v30 = vmax.f32 %v426_v28, 0.0  ;;  %v638_v28 = vld [vmem:[%s1138_s8 + $0x8] sm:$0xff] }
  0x95   : > { %v412_v32 = vpop.permute.xlu0 %411  ;;  %v407_v33 = vpop.permute.xlu1 %406 }
  0x96   : > { %v425_v34 = vadd.f32 %v412_v32, %v397_v29  ;;  %v424_v35 = vadd.f32 %v407_v33, %v396_v31  ;;  %955 = vmatprep.subr.mxu0 %v430_v30  ;;  %974 = vmatprep.subr.mxu1 %v430_v30  ;;  %v622_v44 = vsel %vm615_vm2, %v430_v30, 0.0  ;;  %v637_v29 = vld [vmem:[%s1138_s8] sm:$0xff] }
  0x97   : > { %956 = vmatpush3.msra.mxu0 %v430_v30  ;;  %978 = vmatpush3.msra.mxu1 %v430_v30 }
  0x98   : > { %v429_v36 = vmax.f32 %v425_v34, 0.0  ;;  %v428_v37 = vmax.f32 %v424_v35, 0.0  ;;  %v642_v34 = vld [vmem:[%s1138_s8 + $0x28] sm:$0xff]  ;;  %v641_v35 = vld [vmem:[%s1138_s8 + $0x20] sm:$0xff] }
  0x9a   : > { %957 = vmatprep.subr.mxu0 %v429_v36  ;;  %975 = vmatprep.subr.mxu1 %v429_v36  ;;  %v619_v38 = vsel %vm615_vm2, %v429_v36, 0.0  ;;  %v616_v39 = vsel %vm615_vm2, %v428_v37, 0.0 }
  0x9b   : > { %620 = vadd.xlane.f32.xlu1 %v619_v38  ;;  %958 = vmatpush3.msra.mxu0 %v429_v36 }
  0x9c   : > { %979 = vmatpush3.msra.mxu1 %v429_v36  ;;  %617 = vadd.xlane.f32.xlu0 %v616_v39 }
  0x9d   : > { %959 = vmatprep.subr.mxu0 %v428_v37  ;;  %976 = vmatprep.subr.mxu1 %v428_v37 }
  0x9e   : > { %960 = vmatpush3.msra.mxu0 %v428_v37  ;;  %980 = vmatpush3.msra.mxu1 %v428_v37 }
  0x9f   : > { %962 = vmatmul.mubr.msk.f32.vlgmr.msra.gmra.mxu0 %vm440_vm0, %v433_v40  ;;  %968 = vmatmul.mubr.msk.f32.vlgmr.msra.gmra.mxu1 %vm440_vm0, %v437_v41  ;;  %v640_v40 = vld [vmem:[%s1138_s8 + $0x18] sm:$0xff]  ;;  %v639_v41 = vld [vmem:[%s1138_s8 + $0x10] sm:$0xff] }
  0xa0   : > { %623 = vadd.xlane.f32.xlu0 %v622_v44  ;;  %964 = vmatprep.mubr.msk.f32.mxu0 %vm440_vm0, %v434_v42 }
  0xa1   : > { %970 = vmatprep.mubr.msk.f32.mxu1 %vm440_vm0, %v438_v43 }
  0xa3   : > { %965 = vmatmul.mubr.msk.f32.gmra.mxu0 %vm440_vm0, %v435_v45  ;;  %971 = vmatmul.mubr.msk.f32.gmra.mxu1 %vm440_vm0, %v439_v46  ;;  %v644_v46 = vld [vmem:[%s1138_s8 + $0x38] sm:$0xff] }
  0xa4   : > { %626 = vadd.xlane.f32.xlu0 %v625_v47  ;;  %v643_v47 = vld [vmem:[%s1138_s8 + $0x30] sm:$0xff] }
 0x124   : > { %v621_v50 = vpop.xlane.xlu1 %620 }
 0x125   : > { %v629_v51 = vadd.f32 %v621_v50, %v612_v48  ;;  %v618_v52 = vpop.xlane.xlu0 %617 }
 0x126   : > { %v628_v53 = vadd.f32 %v618_v52, %v611_v49 }
 0x127   : > { %634 = vst.msk [vmem:[%s1133_s29 + $0x8] sm:$0xff] %vm351_vm1, %v629_v51 }
 0x128   : > { %633 = vst.msk [vmem:[%s1133_s29] sm:$0xff] %vm351_vm1, %v628_v53 }
 0x129   : > { %v624_v55 = vpop.xlane.xlu0 %623 }
 0x12a   : > { %v630_v56 = vadd.f32 %v624_v55, %v613_v54 }
 0x12c   : > { %635 = vst.msk [vmem:[%s1133_s29 + $0x10] sm:$0xff] %vm351_vm1, %v630_v56 }
 0x12d   : > { %v627_v58 = vpop.xlane.xlu0 %626 }
 0x12e   : > { %v631_v59 = vadd.f32 %v627_v58, %v614_v57 }
 0x130   : > { %636 = vst.msk [vmem:[%s1133_s29 + $0x18] sm:$0xff] %vm351_vm1, %v631_v59 }
 0x15f   : > { %v963_v60 = vpop.f32.mrf.mxu0  ;;  %v969_v61 = vpop.f32.mrf.mxu1 }
 0x160   : > { %v925_v62 = vpack.c.bf16 %v963_v60, %v963_v60  ;;  %v646_v63 = vmul.f32 %v963_v60, %v963_v60  ;;  %v929_v0 = vpack.c.bf16 %v969_v61, %v969_v61  ;;  %v650_v2 = vmul.f32 %v969_v61, %v969_v61 }
 0x161   : > { %v531_v1 = vpop.f32.mrf.mxu0  ;;  %v551_v3 = vpop.f32.mrf.mxu1 }
 0x162   : > { %604 = vst.msk [vmem:[%s1213_s10 + $0x4] sm:$0xf] %vm602_vm3, %v925_v62  ;;  %v924_v4 = vpack.c.bf16 %v531_v1, %v531_v1  ;;  %v645_v5 = vmul.f32 %v531_v1, %v531_v1  ;;  %608 = vst.msk [vmem:[%s1213_s10 + $0x14] sm:$0xf] %vm602_vm3, %v929_v0  ;;  %v928_v6 = vpack.c.bf16 %v551_v3, %v551_v3  ;;  %v656_v7 = vsel %vm615_vm2, %v646_v63, 0.0 }
 0x163   : > { %v966_v8 = vpop.f32.mrf.mxu0  ;;  %v972_v9 = vpop.f32.mrf.mxu1  ;;  %v649_v10 = vmul.f32 %v551_v3, %v551_v3  ;;  %657 = vadd.xlane.f32.xlu0 %v656_v7  ;;  %v668_v15 = vsel %vm615_vm2, %v650_v2, 0.0 }
 0x164   : > { %603 = vst.msk [vmem:[%s1213_s10] sm:$0xf] %vm602_vm3, %v924_v4  ;;  %607 = vst.msk [vmem:[%s1213_s10 + $0x10] sm:$0xf] %vm602_vm3, %v928_v6  ;;  %v653_v11 = vsel %vm615_vm2, %v645_v5, 0.0  ;;  %v927_v12 = vpack.c.bf16 %v966_v8, %v966_v8  ;;  %v931_v13 = vpack.c.bf16 %v972_v9, %v972_v9  ;;  %v648_v14 = vmul.f32 %v966_v8, %v966_v8 }
 0x165   : > { %654 = vadd.xlane.f32.xlu1 %v653_v11  ;;  %v541_v16 = vpop.f32.mrf.mxu0  ;;  %v561_v17 = vpop.f32.mrf.mxu1  ;;  %v665_v21 = vsel %vm615_vm2, %v649_v10, 0.0  ;;  %v652_v22 = vmul.f32 %v972_v9, %v972_v9 }
 0x166   : > { %606 = vst.msk [vmem:[%s1213_s10 + $0xc] sm:$0xf] %vm602_vm3, %v927_v12  ;;  %v926_v18 = vpack.c.bf16 %v541_v16, %v541_v16  ;;  %610 = vst.msk [vmem:[%s1213_s10 + $0x1c] sm:$0xf] %vm602_vm3, %v931_v13  ;;  %v930_v19 = vpack.c.bf16 %v561_v17, %v561_v17  ;;  %v647_v20 = vmul.f32 %v541_v16, %v541_v16  ;;  %v662_v23 = vsel %vm615_vm2, %v648_v14, 0.0 }
 0x167   : > { %669 = vadd.xlane.f32.xlu0 %v668_v15  ;;  %v651_v24 = vmul.f32 %v561_v17, %v561_v17  ;;  %v674_v26 = vsel %vm615_vm2, %v652_v22, 0.0 }
 0x168   : > { %605 = vst.msk [vmem:[%s1213_s10 + $0x8] sm:$0xf] %vm602_vm3, %v926_v18  ;;  %609 = vst.msk [vmem:[%s1213_s10 + $0x18] sm:$0xf] %vm602_vm3, %v930_v19  ;;  %v659_v25 = vsel %vm615_vm2, %v647_v20, 0.0 }
 0x169   : > { %666 = vadd.xlane.f32.xlu1 %v665_v21  ;;  %v671_v27 = vsel %vm615_vm2, %v651_v24, 0.0 }
 0x16b   : > { %663 = vadd.xlane.f32.xlu0 %v662_v23 }
 0x16d   : > { %660 = vadd.xlane.f32.xlu1 %v659_v25 }
 0x16f   : > { %675 = vadd.xlane.f32.xlu0 %v674_v26 }
 0x171   : > { %672 = vadd.xlane.f32.xlu1 %v671_v27 }
 0x1ec   : > { %v658_v30 = vpop.xlane.xlu0 %657 }
 0x1ed   : > { %v678_v31 = vadd.f32 %v658_v30, %v638_v28 }
 0x1ee   : > { %v655_v32 = vpop.xlane.xlu1 %654 }
 0x1ef   : > { %v677_v33 = vadd.f32 %v655_v32, %v637_v29  ;;  %686 = vst.msk [vmem:[%s1138_s8 + $0x8] sm:$0xff] %vm351_vm1, %v678_v31 }
 0x1f0   : > { %v670_v36 = vpop.xlane.xlu0 %669 }
 0x1f1   : > { %685 = vst.msk [vmem:[%s1138_s8] sm:$0xff] %vm351_vm1, %v677_v33  ;;  %v682_v37 = vadd.f32 %v670_v36, %v642_v34 }
 0x1f2   : > { %v667_v38 = vpop.xlane.xlu1 %666 }
 0x1f3   : > { %v681_v39 = vadd.f32 %v667_v38, %v641_v35  ;;  %690 = vst.msk [vmem:[%s1138_s8 + $0x28] sm:$0xff] %vm351_vm1, %v682_v37 }
 0x1f4   : > { %v664_v42 = vpop.xlane.xlu0 %663 }
 0x1f5   : > { %689 = vst.msk [vmem:[%s1138_s8 + $0x20] sm:$0xff] %vm351_vm1, %v681_v39  ;;  %v680_v43 = vadd.f32 %v664_v42, %v640_v40 }
 0x1f6   : > { %v661_v44 = vpop.xlane.xlu1 %660 }
 0x1f7   : > { %v679_v45 = vadd.f32 %v661_v44, %v639_v41  ;;  %688 = vst.msk [vmem:[%s1138_s8 + $0x18] sm:$0xff] %vm351_vm1, %v680_v43 }
 0x1f8   : > { %v676_v48 = vpop.xlane.xlu0 %675 }
 0x1f9   : > { %687 = vst.msk [vmem:[%s1138_s8 + $0x10] sm:$0xff] %vm351_vm1, %v679_v45  ;;  %v684_v49 = vadd.f32 %v676_v48, %v644_v46 }
 0x1fa   : > { %v673_v50 = vpop.xlane.xlu1 %672 }
 0x1fb   : > { %v683_v51 = vadd.f32 %v673_v50, %v643_v47  ;;  %692 = vst.msk [vmem:[%s1138_s8 + $0x38] sm:$0xff] %vm351_vm1, %v684_v49 }
 0x1fd   : > { %691 = vst.msk [vmem:[%s1138_s8 + $0x30] sm:$0xff] %vm351_vm1, %v683_v51 }
 0x1fe PF: > { %s17_s23 = sadd.s32 1, %s1031_s23   ;;  %s1279_s21 = smov %s1027_s22 }
 0x1ff   : > { %p14_p5 = scmp.ge.s32.totalorder %s17_s23, 4   ;;  %s1280_s22 = smov %s1282_s24 }
 0x201   :  { %16 = sbr.rel (!%p14_p5) target bundleno = 2 (0x2), region = 94 }

// kernel: pointnet_cloud_encoder.7
= control target key start
LH: loop header
LB: loop body
LE: loop exit
PB: predicated region body
PF: predicated region fallthrough
CT: control target
= control target key end

     0   :  { %s534_s12 = smov 0   ;;  %s536_s13 = smov 0   ;;  %s637_s0 = inlined_call_operand.vmem [shape: bf16[2,64,16], index: 0, kind: input, shape index: {}]   ;;  %s638_s1 = inlined_call_operand.vmem [shape: f32[64,1], index: 1, kind: input, shape index: {}]   ;;  %s639_s2 = inlined_call_operand.vmem [shape: f32[64,1], index: 2, kind: input, shape index: {}]   ;;  %s640_s3 = inlined_call_operand.vmem [shape: f32[2,64,16], index: 3, kind: output, shape index: {}]  }
   0x1   :  { %s538_s14 = smov 0  }
   0x2 LB: > { %s25_s15 = sadd.s32 1, %s507_s13  ;;  %p434_p0 = scmp.ge.s32.totalorder %s511_s14, 1  ;;  %s511_s14 = sphi %s538_s14, %s13_s14   ;;  %s507_s13 = sphi %s536_s13, %s642_s13   ;;  %s503_s12 = sphi %s534_s12, %s641_s12  }
   0x3   : > { %p27_p1 = scmp.ge.s32.totalorder %s25_s15, 2  ;;  %p156_p2 = scmp.lt.s32.totalorder %s511_s14, 3 }
   0x5   : > { %s644_s15 = smov (%p27_p1, %s25_s15), 0  ;;  %p157_p3 = pnand %p434_p0, %p156_p2 }
   0x6   : > { %p186_p4 = scmp.lt.s32.totalorder (!%p157_p3), %s503_s12, 1 }
   0x7   : > { %160 = sbr.rel (%p157_p3) target bundleno = 171 (0xab), region = 32 }
   0xc   : > { %v220_v0 = vld [vmem:[%s638_s1 + $0x10] sm:$0xff]  ;;  %v218_v1 = vld [vmem:[%s638_s1] sm:$0xff]  ;;  %v513_v2 = vmov 0   ;;  %v221_v3 = vld [vmem:[%s638_s1 + $0x18] sm:$0xff]  ;;  %s646_s12 = smov (!%p186_p4, %s503_s12), 1  ;;  %vm338_vm0 = vcmask 130048  }
   0xd   : > { %488 = vset.pattern.permute.xlu1 %v513_v2  ;;  %487 = vset.pattern.permute.xlu0 %v513_v2  ;;  %v219_v4 = vld [vmem:[%s638_s1 + $0x8] sm:$0xff]  ;;  %v222_v6 = vld [vmem:[%s638_s1 + $0x20] sm:$0xff]  ;;  %v225_v7 = vld [vmem:[%s638_s1 + $0x38] sm:$0xff]  ;;  %s441_s25 = sshll.u32 %s646_s12, 5  ;;  %s442_s29 = sshll.u32 %s646_s12, 6 }
   0xe   : > { %238 = vperm.xlu1 %488, %v220_v0   ;;  %228 = vperm.xlu0 %487, %v218_v1   ;;  %v223_v5 = vld [vmem:[%s638_s1 + $0x28] sm:$0xff]  ;;  %v224_v8 = vld [vmem:[%s638_s1 + $0x30] sm:$0xff]  ;;  %v274_v10 = vld [vmem:[%s639_s2] sm:$0xff]  ;;  %s193_s28 = scalar_lea.vmem %s637_s0, %s441_s25  ;;  %s610_s5 = scalar_lea.vmem %s640_s3, %s442_s29 }
   0xf   : > { %v275_v9 = vld [vmem:[%s639_s2 + $0x8] sm:$0xff]  ;;  %v277_v11 = vld [vmem:[%s639_s2 + $0x18] sm:$0xff]  ;;  %v276_v12 = vld [vmem:[%s639_s2 + $0x10] sm:$0xff] }
  0x10   : > { %v279_v13 = vld [vmem:[%s639_s2 + $0x28] sm:$0xff]  ;;  %v278_v14 = vld [vmem:[%s639_s2 + $0x20] sm:$0xff]  ;;  %v281_v15 = vld [vmem:[%s639_s2 + $0x38] sm:$0xff] }
  0x11   : > { %v280_v16 = vld [vmem:[%s639_s2 + $0x30] sm:$0xff]  ;;  %v444_v21 = vld [vmem:[%s193_s28] sm:$0xff]   ;;  %v459_v26 = vld [vmem:[%s193_s28 + $0x8] sm:$0xff]  }
  0x12   : > { %243 = vperm.xlu1 %488, %v221_v3   ;;  %233 = vperm.xlu0 %487, %v219_v4   ;;  %v445_v24 = vunpack.c.l.bf16 %v444_v21  ;;  %v446_v25 = vunpack.c.h.bf16 %v444_v21  ;;  %v449_v29 = vunpack.c.l.bf16 %v459_v26  ;;  %v450_v31 = vunpack.c.h.bf16 %v459_v26  ;;  %v460_v33 = vld [vmem:[%s193_s28 + $0x10] sm:$0xff]   ;;  %v461_v42 = vld [vmem:[%s193_s28 + $0x18] sm:$0xff]  }
  0x13   : > { %v454_v38 = vunpack.c.h.bf16 %v460_v33  ;;  %v453_v39 = vunpack.c.l.bf16 %v460_v33  ;;  %v458_v49 = vunpack.c.h.bf16 %v461_v42  ;;  %v457_v50 = vunpack.c.l.bf16 %v461_v42 }
  0x16   : > { %253 = vperm.xlu1 %488, %v223_v5   ;;  %248 = vperm.xlu0 %487, %v222_v6  }
  0x1a   : > { %263 = vperm.xlu1 %488, %v225_v7   ;;  %258 = vperm.xlu0 %487, %v224_v8  }
  0x1e   : > { %289 = vperm.xlu1 %488, %v275_v9   ;;  %284 = vperm.xlu0 %487, %v274_v10  }
  0x22   : > { %299 = vperm.xlu1 %488, %v277_v11   ;;  %294 = vperm.xlu0 %487, %v276_v12  }
  0x26   : > { %309 = vperm.xlu1 %488, %v279_v13   ;;  %304 = vperm.xlu0 %487, %v278_v14  }
  0x2a   : > { %319 = vperm.xlu1 %488, %v281_v15   ;;  %314 = vperm.xlu0 %487, %v280_v16  }
  0x89   : > { %v239_v17 = vpop.permute.xlu1 %238  ;;  %v229_v18 = vpop.permute.xlu0 %228 }
  0x8a   : > { %v266_v30 = vmul.f32 %v445_v24, %v229_v18  ;;  %v268_v40 = vmul.f32 %v449_v29, %v239_v17 }
  0x8d   : > { %v244_v19 = vpop.permute.xlu1 %243  ;;  %v234_v20 = vpop.permute.xlu0 %233 }
  0x8e   : > { %v267_v32 = vmul.f32 %v446_v25, %v234_v20  ;;  %v269_v41 = vmul.f32 %v450_v31, %v244_v19 }
  0x91   : > { %v254_v22 = vpop.permute.xlu1 %253  ;;  %v249_v23 = vpop.permute.xlu0 %248 }
  0x92   : > { %v271_v51 = vmul.f32 %v454_v38, %v254_v22  ;;  %v270_v52 = vmul.f32 %v453_v39, %v249_v23 }
  0x95   : > { %v264_v27 = vpop.permute.xlu1 %263  ;;  %v259_v28 = vpop.permute.xlu0 %258 }
  0x96   : > { %v273_v59 = vmul.f32 %v458_v49, %v264_v27  ;;  %v272_v60 = vmul.f32 %v457_v50, %v259_v28 }
  0x99   : > { %v290_v34 = vpop.permute.xlu1 %289  ;;  %v285_v35 = vpop.permute.xlu0 %284 }
  0x9a   : > { %v323_v36 = vadd.f32 %v290_v34, %v267_v32  ;;  %v322_v37 = vadd.f32 %v285_v35, %v266_v30 }
  0x9c   : > { %v331_v43 = vmax.f32 %v323_v36, 0.0  ;;  %v330_v44 = vmax.f32 %v322_v37, 0.0 }
  0x9d   : > { %v300_v45 = vpop.permute.xlu1 %299  ;;  %v295_v46 = vpop.permute.xlu0 %294 }
  0x9e   : > { %340 = vst.msk [vmem:[%s610_s5 + $0x8] sm:$0xff] %vm338_vm0, %v331_v43  ;;  %339 = vst.msk [vmem:[%s610_s5] sm:$0xff] %vm338_vm0, %v330_v44  ;;  %v325_v47 = vadd.f32 %v300_v45, %v269_v41  ;;  %v324_v48 = vadd.f32 %v295_v46, %v268_v40 }
  0xa0   : > { %v333_v53 = vmax.f32 %v325_v47, 0.0  ;;  %v332_v54 = vmax.f32 %v324_v48, 0.0 }
  0xa1   : > { %v310_v55 = vpop.permute.xlu1 %309  ;;  %v305_v56 = vpop.permute.xlu0 %304 }
  0xa2   : > { %342 = vst.msk [vmem:[%s610_s5 + $0x18] sm:$0xff] %vm338_vm0, %v333_v53  ;;  %341 = vst.msk [vmem:[%s610_s5 + $0x10] sm:$0xff] %vm338_vm0, %v332_v54  ;;  %v327_v57 = vadd.f32 %v310_v55, %v271_v51  ;;  %v326_v58 = vadd.f32 %v305_v56, %v270_v52 }
  0xa4   : > { %v335_v61 = vmax.f32 %v327_v57, 0.0  ;;  %v334_v62 = vmax.f32 %v326_v58, 0.0 }
  0xa5   : > { %v320_v63 = vpop.permute.xlu1 %319  ;;  %v315_v0 = vpop.permute.xlu0 %314 }
  0xa6   : > { %344 = vst.msk [vmem:[%s610_s5 + $0x28] sm:$0xff] %vm338_vm0, %v335_v61  ;;  %343 = vst.msk [vmem:[%s610_s5 + $0x20] sm:$0xff] %vm338_vm0, %v334_v62  ;;  %v329_v1 = vadd.f32 %v320_v63, %v273_v59  ;;  %v328_v2 = vadd.f32 %v315_v0, %v272_v60 }
  0xa8   : > { %v337_v3 = vmax.f32 %v329_v1, 0.0  ;;  %v336_v4 = vmax.f32 %v328_v2, 0.0 }
  0xaa   : > { %346 = vst.msk [vmem:[%s610_s5 + $0x38] sm:$0xff] %vm338_vm0, %v337_v3  ;;  %345 = vst.msk [vmem:[%s610_s5 + $0x30] sm:$0xff] %vm338_vm0, %v336_v4 }
  0xab PF: > { %s13_s14 = sadd.s32 1, %s511_s14   ;;  %s641_s12 = smov %s507_s13 }
  0xac   : > { %p10_p5 = scmp.ge.s32.totalorder %s13_s14, 4   ;;  %s642_s13 = smov %s644_s15 }
  0xae   :  { %12 = sbr.rel (!%p10_p5) target bundleno = 2 (0x2), region = 62 }

</bundles_post_ra>
